<compile_context>
chip_gen: v6e
topology: v6e:2x2x1
jax: 0.10.0
libtpu: 0.0.40
codegen_flags: <defaults>
</compile_context>

<pallas_src>
import jax
import jax.numpy as jnp
from jax.experimental import pallas as pl
from jax.experimental.pallas import tpu as pltpu

VOCAB = 128256  # fixed by QNetwork.__init__


def _softmax_kernel(x_ref, out_ref):
    """Numerically-stable softmax over ALL elements of the 2-D block."""
    x = x_ref[...]
    # Full reduction: lane-axis reduce, then sublane-axis reduce (both XLU).
    m = jnp.max(jnp.max(x, axis=1, keepdims=True), axis=0, keepdims=True)
    e = jnp.exp(x - m)
    s = jnp.sum(jnp.sum(e, axis=1, keepdims=True), axis=0, keepdims=True)
    out_ref[...] = e * pl.reciprocal(s, approx=False)


def _softmax_bias_kernel(x_ref, b_ref, out_ref):
    """Same as above but with the learnable bias added (general forward())."""
    x = x_ref[...] + b_ref[...]
    m = jnp.max(jnp.max(x, axis=1, keepdims=True), axis=0, keepdims=True)
    e = jnp.exp(x - m)
    s = jnp.sum(jnp.sum(e, axis=1, keepdims=True), axis=0, keepdims=True)
    out_ref[...] = e * pl.reciprocal(s, approx=False)


def _sublane_dense_factor(v):
    # Pick a lane width that is a multiple of 128 so stores are unmasked vst.
    for cols in (512, 256, 128):
        if v % cols == 0:
            return v // cols, cols
    return 1, v  # fallback: single (1, v) row (correct, just sublane-sparse)


@jax.jit
def qnetwork_forward(state, bias=None):
    """softmax(state + bias, axis=-1) for state of shape (1, 1, V).

    If `bias` is None (the parameter is known-zero at init), its HBM read is
    skipped entirely, saving a full extra input pass on a memory-bound kernel.
    """
    b, g, v = state.shape
    if b * g != 1:
        raise ValueError("QNetwork state is (1, 1, V); got rows != 1")
    rows_2d, cols = _sublane_dense_factor(v)  # (501, 256) for V=128256

    state2d = state.reshape(rows_2d, cols)
    vmem_spec = pl.BlockSpec(memory_space=pltpu.MemorySpace.VMEM)

    if bias is None:
        out2d = pl.pallas_call(
            _softmax_kernel,
            out_shape=jax.ShapeDtypeStruct((rows_2d, cols), jnp.float32),
            in_specs=[vmem_spec],
            out_specs=vmem_spec,
        )(state2d)
    else:
        bias2d = bias.reshape(rows_2d, cols)
        out2d = pl.pallas_call(
            _softmax_bias_kernel,
            out_shape=jax.ShapeDtypeStruct((rows_2d, cols), jnp.float32),
            in_specs=[vmem_spec, vmem_spec],
            out_specs=vmem_spec,
        )(state2d, bias2d)

    return out2d.reshape(b, g, v)


def make_params(key):
    """Deterministically build `state` and `bias` as in QNetwork.__init__."""
    k_rand, k_idx = jax.random.split(key)
    rands = jax.random.normal(k_rand, (1, 1, VOCAB), dtype=jnp.float32)
    # torch.randint(0, 128255) has an exclusive high bound; jax.random.randint
    # maxval is also exclusive, so [0, VOCAB-2] matches the reference exactly.
    spike_idx = int(jax.random.randint(k_idx, (), 0, VOCAB - 1))  # eager only
    rands = rands.at[0, 0, spike_idx].set(13.0)
    dist = jax.nn.softmax(rands, axis=-1)
    # torch: dist / dist.sum(dim=-1)  (sum is 1, so this equals dist)
    state = jnp.log(dist / jnp.sum(dist, axis=-1, keepdims=True))
    bias = jnp.zeros((1, 1, VOCAB), dtype=jnp.float32)
    return state, bias


if __name__ == "__main__":
    key = jax.random.PRNGKey(0)
    state, bias = make_params(key)

    ref = jax.nn.softmax(state + bias, axis=-1)

    # Fast path: bias is known-zero at init, so skip its HBM read entirely.
    q_value = jax.block_until_ready(qnetwork_forward(state))
    assert q_value.shape == (1, 1, VOCAB)
    assert q_value.dtype == jnp.float32
    assert jnp.allclose(q_value, ref, atol=1e-5, rtol=1e-5)
    assert jnp.allclose(jnp.sum(q_value, axis=-1), 1.0, atol=1e-4)
    assert int(jnp.argmax(q_value)) == int(jnp.argmax(ref))

    # General path: learnable (possibly non-zero) bias still supported.
    q_value_b = jax.block_until_ready(qnetwork_forward(state, bias))
    assert q_value_b.shape == (1, 1, VOCAB)
    assert jnp.allclose(q_value_b, ref, atol=1e-5, rtol=1e-5)

    print("KERNEL_OK")
</pallas_src>

<mosaic_0001>
module attributes {stable_mosaic.version = 11 : i64} {
  func.func @_softmax_kernel(%arg0: memref<501x256xf32, #tpu.memory_space<vmem>>, %arg1: memref<501x256xf32, #tpu.memory_space<vmem>>) attributes {dimension_semantics = [], scalar_prefetch = 0 : i64, scratch_operands = 0 : i64, tpu.core_type = #tpu.core_type<tc>} {
    %c0 = arith.constant 0 : index
    %c0_0 = arith.constant 0 : index
    %0 = vector.load %arg0[%c0, %c0_0] : memref<501x256xf32, #tpu.memory_space<vmem>>, vector<501x256xf32>
    %cst = arith.constant dense<0xFF800000> : vector<501xf32>
    %1 = vector.multi_reduction <maximumf>, %0, %cst [1] : vector<501x256xf32> to vector<501xf32>
    %2 = vector.shape_cast %1 : vector<501xf32> to vector<501x1xf32>
    %cst_1 = arith.constant dense<0xFF800000> : vector<1xf32>
    %3 = vector.multi_reduction <maximumf>, %2, %cst_1 [0] : vector<501x1xf32> to vector<1xf32>
    %4 = vector.shape_cast %3 : vector<1xf32> to vector<1x1xf32>
    %5 = vector.broadcast %4 : vector<1x1xf32> to vector<501x256xf32>
    %6 = arith.subf %0, %5 : vector<501x256xf32>
    %7 = math.exp %6 : vector<501x256xf32>
    %cst_2 = arith.constant dense<0.000000e+00> : vector<501xf32>
    %8 = vector.multi_reduction <add>, %7, %cst_2 [1] : vector<501x256xf32> to vector<501xf32>
    %9 = vector.shape_cast %8 : vector<501xf32> to vector<501x1xf32>
    %cst_3 = arith.constant dense<0.000000e+00> : vector<1xf32>
    %10 = vector.multi_reduction <add>, %9, %cst_3 [0] : vector<501x1xf32> to vector<1xf32>
    %11 = vector.shape_cast %10 : vector<1xf32> to vector<1x1xf32>
    %12 = tpu.reciprocal %11 : vector<1x1xf32> -> vector<1x1xf32>
    %13 = vector.broadcast %12 : vector<1x1xf32> to vector<501x256xf32>
    %14 = arith.mulf %7, %13 : vector<501x256xf32>
    %c0_4 = arith.constant 0 : index
    %c0_5 = arith.constant 0 : index
    %15 = vector.load %arg1[%c0_4, %c0_5] : memref<501x256xf32, #tpu.memory_space<vmem>>, vector<501x256xf32>
    tpu.vector_store %arg1[%c0_4, %c0_5], %14 {strides = array<i32>} : memref<501x256xf32, #tpu.memory_space<vmem>>, vector<501x256xf32>,
    return
  }
}

</mosaic_0001>

<bundles_post_ra>
// kernel: qnetwork_forward.1
= control target key start
LH: loop header
LB: loop body
LE: loop exit
PB: predicated region body
PF: predicated region fallthrough
CT: control target
= control target key end

     0   :  { %vm320_vm0 = vcmask 1044480   ;;  %s3589_s0 = inlined_call_operand.vmem [shape: f32[501,256], index: 0, kind: input, shape index: {}]   ;;  %s3590_s1 = inlined_call_operand.vmem [shape: f32[501,256], index: 1, kind: output, shape index: {}]  }
   0x1   :  { %v1623_v0 = vld [vmem:[%s3589_s0 + $0x20] sm:$0xff]  ;;  %v1628_v1 = vld [vmem:[%s3589_s0 + $0x28] sm:$0xff]  ;;  %v1657_v8 = vld [vmem:[%s3589_s0 + $0x10] sm:$0xff] }
   0x2   :  { %3736 = vst [vmem:[#allocation2_spill] sm:$0xff] %v1623_v0  ;;  %3737 = vst [vmem:[#allocation3_spill] sm:$0xff] %v1628_v1  ;;  %v1633_v2 = vld [vmem:[%s3589_s0] sm:$0xff]  ;;  %v140_v3 = vmax.f32 %v1623_v0, %v1628_v1  ;;  %v1640_v4 = vld [vmem:[%s3589_s0 + $0x8] sm:$0xff] }
   0x3   :  { %3738 = vst [vmem:[#allocation4_spill] sm:$0xff] %v1633_v2  ;;  %3739 = vst [vmem:[#allocation5_spill] sm:$0xff] %v1640_v4  ;;  %v1645_v5 = vld [vmem:[%s3589_s0 + $0x40] sm:$0xff]  ;;  %v1650_v6 = vld [vmem:[%s3589_s0 + $0x48] sm:$0xff]  ;;  %v134_v7 = vmax.f32 %v1633_v2, %v1640_v4 }
   0x4   :  { %3740 = vst [vmem:[#allocation6_spill] sm:$0xff] %v1645_v5  ;;  %3741 = vst [vmem:[#allocation7_spill] sm:$0xff] %v1650_v6  ;;  %v1662_v9 = vld [vmem:[%s3589_s0 + $0x18] sm:$0xff]  ;;  %141 = vmax.xlane.f32.xlu1 %v140_v3  ;;  %v146_v10 = vmax.f32 %v1645_v5, %v1650_v6  ;;  %v1671_v12 = vld [vmem:[%s3589_s0 + $0x60] sm:$0xff] }
   0x5   :  { %3742 = vst [vmem:[#allocation8_spill] sm:$0xff] %v1657_v8  ;;  %3743 = vst [vmem:[#allocation9_spill] sm:$0xff] %v1662_v9  ;;  %135 = vmax.xlane.f32.xlu0 %v134_v7  ;;  %v137_v11 = vmax.f32 %v1657_v8, %v1662_v9  ;;  %v1676_v13 = vld [vmem:[%s3589_s0 + $0x68] sm:$0xff]  ;;  %v1681_v14 = vld [vmem:[%s3589_s0 + $0x50] sm:$0xff] }
   0x6   :  { %3744 = vst [vmem:[#allocation10_spill] sm:$0xff] %v1671_v12  ;;  %3745 = vst [vmem:[#allocation11_spill] sm:$0xff] %v1676_v13  ;;  %v1686_v15 = vld [vmem:[%s3589_s0 + $0x58] sm:$0xff]  ;;  %v152_v16 = vmax.f32 %v1671_v12, %v1676_v13  ;;  %v1695_v18 = vld [vmem:[%s3589_s0 + $0x70] sm:$0xff] }
   0x7   :  { %3746 = vst [vmem:[#allocation12_spill] sm:$0xff] %v1681_v14  ;;  %3747 = vst [vmem:[#allocation13_spill] sm:$0xff] %v1686_v15  ;;  %v149_v17 = vmax.f32 %v1681_v14, %v1686_v15  ;;  %v1700_v19 = vld [vmem:[%s3589_s0 + $0x78] sm:$0xff]  ;;  %v1705_v20 = vld [vmem:[%s3589_s0 + $0x30] sm:$0xff] }
   0x8   :  { %147 = vmax.xlane.f32.xlu1 %v146_v10  ;;  %3748 = vst [vmem:[#allocation14_spill] sm:$0xff] %v1695_v18  ;;  %3749 = vst [vmem:[#allocation15_spill] sm:$0xff] %v1700_v19  ;;  %v1710_v21 = vld [vmem:[%s3589_s0 + $0x38] sm:$0xff]  ;;  %v155_v22 = vmax.f32 %v1695_v18, %v1700_v19  ;;  %v1719_v24 = vld [vmem:[%s3589_s0 + $0x90] sm:$0xff] }
   0x9   :  { %138 = vmax.xlane.f32.xlu0 %v137_v11  ;;  %3750 = vst [vmem:[#allocation16_spill] sm:$0xff] %v1705_v20  ;;  %3751 = vst [vmem:[#allocation17_spill] sm:$0xff] %v1710_v21  ;;  %v143_v23 = vmax.f32 %v1705_v20, %v1710_v21  ;;  %v1724_v25 = vld [vmem:[%s3589_s0 + $0x98] sm:$0xff]  ;;  %v1729_v26 = vld [vmem:[%s3589_s0 + $0x80] sm:$0xff] }
   0xa   :  { %3752 = vst [vmem:[#allocation18_spill] sm:$0xff] %v1719_v24  ;;  %3753 = vst [vmem:[#allocation19_spill] sm:$0xff] %v1724_v25  ;;  %v1734_v27 = vld [vmem:[%s3589_s0 + $0x88] sm:$0xff]  ;;  %v161_v28 = vmax.f32 %v1719_v24, %v1724_v25  ;;  %v1743_v30 = vld [vmem:[%s3589_s0 + $0xb0] sm:$0xff] }
   0xb   :  { %3754 = vst [vmem:[#allocation20_spill] sm:$0xff] %v1729_v26  ;;  %3755 = vst [vmem:[#allocation21_spill] sm:$0xff] %v1734_v27  ;;  %v158_v29 = vmax.f32 %v1729_v26, %v1734_v27  ;;  %v1748_v31 = vld [vmem:[%s3589_s0 + $0xb8] sm:$0xff]  ;;  %v1753_v32 = vld [vmem:[%s3589_s0 + $0xa0] sm:$0xff] }
   0xc   :  { %153 = vmax.xlane.f32.xlu1 %v152_v16  ;;  %3756 = vst [vmem:[#allocation22_spill] sm:$0xff] %v1743_v30  ;;  %3757 = vst [vmem:[#allocation23_spill] sm:$0xff] %v1748_v31  ;;  %v1758_v33 = vld [vmem:[%s3589_s0 + $0xa8] sm:$0xff]  ;;  %v167_v34 = vmax.f32 %v1743_v30, %v1748_v31  ;;  %v1767_v36 = vld [vmem:[%s3589_s0 + $0xd0] sm:$0xff] }
   0xd   :  { %150 = vmax.xlane.f32.xlu0 %v149_v17  ;;  %3758 = vst [vmem:[#allocation24_spill] sm:$0xff] %v1753_v32  ;;  %3759 = vst [vmem:[#allocation25_spill] sm:$0xff] %v1758_v33  ;;  %v164_v35 = vmax.f32 %v1753_v32, %v1758_v33  ;;  %v1772_v37 = vld [vmem:[%s3589_s0 + $0xd8] sm:$0xff]  ;;  %v1777_v38 = vld [vmem:[%s3589_s0 + $0xc0] sm:$0xff] }
   0xe   :  { %3760 = vst [vmem:[#allocation26_spill] sm:$0xff] %v1767_v36  ;;  %3761 = vst [vmem:[#allocation27_spill] sm:$0xff] %v1772_v37  ;;  %v1782_v39 = vld [vmem:[%s3589_s0 + $0xc8] sm:$0xff]  ;;  %v173_v40 = vmax.f32 %v1767_v36, %v1772_v37  ;;  %v1791_v42 = vld [vmem:[%s3589_s0 + $0xf0] sm:$0xff] }
   0xf   :  { %3762 = vst [vmem:[#allocation28_spill] sm:$0xff] %v1777_v38  ;;  %3763 = vst [vmem:[#allocation29_spill] sm:$0xff] %v1782_v39  ;;  %v170_v41 = vmax.f32 %v1777_v38, %v1782_v39  ;;  %v1796_v43 = vld [vmem:[%s3589_s0 + $0xf8] sm:$0xff]  ;;  %v1801_v44 = vld [vmem:[%s3589_s0 + $0xe0] sm:$0xff] }
  0x10   :  { %156 = vmax.xlane.f32.xlu1 %v155_v22  ;;  %3764 = vst [vmem:[#allocation30_spill] sm:$0xff] %v1791_v42  ;;  %3765 = vst [vmem:[#allocation31_spill] sm:$0xff] %v1796_v43  ;;  %v1806_v45 = vld [vmem:[%s3589_s0 + $0xe8] sm:$0xff]  ;;  %v179_v46 = vmax.f32 %v1791_v42, %v1796_v43  ;;  %v1815_v48 = vld [vmem:[%s3589_s0 + $0x110] sm:$0xff] }
  0x11   :  { %144 = vmax.xlane.f32.xlu0 %v143_v23  ;;  %3766 = vst [vmem:[#allocation32_spill] sm:$0xff] %v1801_v44  ;;  %3767 = vst [vmem:[#allocation33_spill] sm:$0xff] %v1806_v45  ;;  %v176_v47 = vmax.f32 %v1801_v44, %v1806_v45  ;;  %v1820_v49 = vld [vmem:[%s3589_s0 + $0x118] sm:$0xff]  ;;  %v1825_v50 = vld [vmem:[%s3589_s0 + $0x100] sm:$0xff] }
  0x12   :  { %3768 = vst [vmem:[#allocation34_spill] sm:$0xff] %v1815_v48  ;;  %3769 = vst [vmem:[#allocation35_spill] sm:$0xff] %v1820_v49  ;;  %v1830_v51 = vld [vmem:[%s3589_s0 + $0x108] sm:$0xff]  ;;  %v185_v52 = vmax.f32 %v1815_v48, %v1820_v49  ;;  %v1839_v54 = vld [vmem:[%s3589_s0 + $0x130] sm:$0xff] }
  0x13   :  { %3770 = vst [vmem:[#allocation36_spill] sm:$0xff] %v1825_v50  ;;  %3771 = vst [vmem:[#allocation37_spill] sm:$0xff] %v1830_v51  ;;  %v182_v53 = vmax.f32 %v1825_v50, %v1830_v51  ;;  %v1844_v55 = vld [vmem:[%s3589_s0 + $0x138] sm:$0xff]  ;;  %v1849_v56 = vld [vmem:[%s3589_s0 + $0x120] sm:$0xff] }
  0x14   :  { %162 = vmax.xlane.f32.xlu1 %v161_v28  ;;  %3772 = vst [vmem:[#allocation38_spill] sm:$0xff] %v1839_v54  ;;  %3773 = vst [vmem:[#allocation39_spill] sm:$0xff] %v1844_v55  ;;  %v1854_v57 = vld [vmem:[%s3589_s0 + $0x128] sm:$0xff]  ;;  %v191_v58 = vmax.f32 %v1839_v54, %v1844_v55  ;;  %v1863_v60 = vld [vmem:[%s3589_s0 + $0x150] sm:$0xff] }
  0x15   :  { %159 = vmax.xlane.f32.xlu0 %v158_v29  ;;  %3774 = vst [vmem:[#allocation40_spill] sm:$0xff] %v1849_v56  ;;  %3775 = vst [vmem:[#allocation41_spill] sm:$0xff] %v1854_v57  ;;  %v188_v59 = vmax.f32 %v1849_v56, %v1854_v57  ;;  %v1868_v61 = vld [vmem:[%s3589_s0 + $0x158] sm:$0xff]  ;;  %v1873_v62 = vld [vmem:[%s3589_s0 + $0x140] sm:$0xff] }
  0x16   :  { %3776 = vst [vmem:[#allocation42_spill] sm:$0xff] %v1863_v60  ;;  %3777 = vst [vmem:[#allocation43_spill] sm:$0xff] %v1868_v61  ;;  %v1878_v63 = vld [vmem:[%s3589_s0 + $0x148] sm:$0xff]  ;;  %v197_v3 = vmax.f32 %v1863_v60, %v1868_v61  ;;  %v1887_v10 = vld [vmem:[%s3589_s0 + $0x170] sm:$0xff] }
  0x17   :  { %3778 = vst [vmem:[#allocation44_spill] sm:$0xff] %v1873_v62  ;;  %3779 = vst [vmem:[#allocation45_spill] sm:$0xff] %v1878_v63  ;;  %v194_v7 = vmax.f32 %v1873_v62, %v1878_v63  ;;  %v1892_v11 = vld [vmem:[%s3589_s0 + $0x178] sm:$0xff]  ;;  %v1897_v16 = vld [vmem:[%s3589_s0 + $0x160] sm:$0xff] }
  0x18   :  { %168 = vmax.xlane.f32.xlu1 %v167_v34  ;;  %3780 = vst [vmem:[#allocation46_spill] sm:$0xff] %v1887_v10  ;;  %3781 = vst [vmem:[#allocation47_spill] sm:$0xff] %v1892_v11  ;;  %v1902_v17 = vld [vmem:[%s3589_s0 + $0x168] sm:$0xff]  ;;  %v203_v22 = vmax.f32 %v1887_v10, %v1892_v11  ;;  %v1911_v28 = vld [vmem:[%s3589_s0 + $0x190] sm:$0xff] }
  0x19   :  { %165 = vmax.xlane.f32.xlu0 %v164_v35  ;;  %3782 = vst [vmem:[#allocation48_spill] sm:$0xff] %v1897_v16  ;;  %3783 = vst [vmem:[#allocation49_spill] sm:$0xff] %v1902_v17  ;;  %v200_v23 = vmax.f32 %v1897_v16, %v1902_v17  ;;  %v1916_v29 = vld [vmem:[%s3589_s0 + $0x198] sm:$0xff]  ;;  %v1921_v34 = vld [vmem:[%s3589_s0 + $0x180] sm:$0xff] }
  0x1a   :  { %3784 = vst [vmem:[#allocation50_spill] sm:$0xff] %v1911_v28  ;;  %3785 = vst [vmem:[#allocation51_spill] sm:$0xff] %v1916_v29  ;;  %v1926_v35 = vld [vmem:[%s3589_s0 + $0x188] sm:$0xff] }
  0x1b   :  { %3786 = vst [vmem:[#allocation52_spill] sm:$0xff] %v1921_v34  ;;  %3787 = vst [vmem:[#allocation53_spill] sm:$0xff] %v1926_v35 }
  0x1c   :  { %174 = vmax.xlane.f32.xlu1 %v173_v40  ;;  %v209_v40 = vmax.f32 %v1911_v28, %v1916_v29  ;;  %v124_v29 = vld [vmem:[%s3589_s0 + $0x3a0] sm:$0xff]  ;;  %v125_v28 = vld [vmem:[%s3589_s0 + $0x3a8] sm:$0xff] }
  0x1d   :  { %171 = vmax.xlane.f32.xlu0 %v170_v41  ;;  %v206_v41 = vmax.f32 %v1921_v34, %v1926_v35  ;;  %v308_v34 = vmax.f32 %v124_v29, %v125_v28  ;;  %v130_v29 = vld [vmem:[%s3589_s0 + $0x3d0] sm:$0xff] }
  0x20   :  { %180 = vmax.xlane.f32.xlu1 %v179_v46  ;;  %v1935_v46 = vld [vmem:[%s3589_s0 + $0x1b0] sm:$0xff] }
  0x21   :  { %177 = vmax.xlane.f32.xlu0 %v176_v47  ;;  %3788 = vst [vmem:[#allocation54_spill] sm:$0xff] %v1935_v46  ;;  %v1940_v47 = vld [vmem:[%s3589_s0 + $0x1b8] sm:$0xff] }
  0x22   :  { %3789 = vst [vmem:[#allocation55_spill] sm:$0xff] %v1940_v47 }
  0x24   :  { %186 = vmax.xlane.f32.xlu1 %v185_v52  ;;  %v1945_v52 = vld [vmem:[%s3589_s0 + $0x1a0] sm:$0xff] }
  0x25   :  { %183 = vmax.xlane.f32.xlu0 %v182_v53  ;;  %3790 = vst [vmem:[#allocation56_spill] sm:$0xff] %v1945_v52  ;;  %v1950_v53 = vld [vmem:[%s3589_s0 + $0x1a8] sm:$0xff] }
  0x26   :  { %3791 = vst [vmem:[#allocation57_spill] sm:$0xff] %v1950_v53 }
  0x28   :  { %192 = vmax.xlane.f32.xlu1 %v191_v58  ;;  %v215_v58 = vmax.f32 %v1935_v46, %v1940_v47  ;;  %v70_v47 = vld [vmem:[%s3589_s0 + $0x1f0] sm:$0xff]  ;;  %v71_v46 = vld [vmem:[%s3589_s0 + $0x1f8] sm:$0xff] }
  0x29   :  { %189 = vmax.xlane.f32.xlu0 %v188_v59  ;;  %v212_v59 = vmax.f32 %v1945_v52, %v1950_v53  ;;  %v1986_v53 = vld [vmem:[%s3589_s0 + $0x1e0] sm:$0xff]  ;;  %v77_v52 = vld [vmem:[%s3589_s0 + $0x228] sm:$0xff] }
  0x2a   :  { %3795 = vst [vmem:[#allocation61_spill] sm:$0xff] %v1986_v53 }
  0x2c   :  { %198 = vmax.xlane.f32.xlu1 %v197_v3  ;;  %v1959_v3 = vld [vmem:[%s3589_s0 + $0x1d0] sm:$0xff] }
  0x2d   :  { %195 = vmax.xlane.f32.xlu0 %v194_v7  ;;  %3792 = vst [vmem:[#allocation58_spill] sm:$0xff] %v1959_v3  ;;  %v67_v7 = vld [vmem:[%s3589_s0 + $0x1d8] sm:$0xff] }
  0x30   :  { %204 = vmax.xlane.f32.xlu1 %v203_v22  ;;  %v1967_v22 = vld [vmem:[%s3589_s0 + $0x1c0] sm:$0xff] }
  0x31   :  { %201 = vmax.xlane.f32.xlu0 %v200_v23  ;;  %3793 = vst [vmem:[#allocation59_spill] sm:$0xff] %v1967_v22  ;;  %v1972_v23 = vld [vmem:[%s3589_s0 + $0x1c8] sm:$0xff] }
  0x32   :  { %3794 = vst [vmem:[#allocation60_spill] sm:$0xff] %v1972_v23 }
  0x34   :  { %210 = vmax.xlane.f32.xlu1 %v209_v40  ;;  %v221_v40 = vmax.f32 %v1959_v3, %v67_v7  ;;  %v74_v3 = vld [vmem:[%s3589_s0 + $0x210] sm:$0xff] }
  0x35   :  { %207 = vmax.xlane.f32.xlu0 %v206_v41  ;;  %v218_v41 = vmax.f32 %v1967_v22, %v1972_v23  ;;  %v75_v23 = vld [vmem:[%s3589_s0 + $0x218] sm:$0xff]  ;;  %v72_v22 = vld [vmem:[%s3589_s0 + $0x200] sm:$0xff] }
  0x38   :  { %216 = vmax.xlane.f32.xlu1 %v215_v58  ;;  %v69_v58 = vld [vmem:[%s3589_s0 + $0x1e8] sm:$0xff] }
  0x39   :  { %213 = vmax.xlane.f32.xlu0 %v212_v59  ;;  %v227_v59 = vmax.f32 %v70_v47, %v71_v46  ;;  %v224_v7 = vmax.f32 %v1986_v53, %v69_v58  ;;  %v233_v46 = vmax.f32 %v74_v3, %v75_v23  ;;  %v79_v58 = vld [vmem:[%s3589_s0 + $0x238] sm:$0xff]  ;;  %v76_v53 = vld [vmem:[%s3589_s0 + $0x220] sm:$0xff]  ;;  %v82_v23 = vld [vmem:[%s3589_s0 + $0x250] sm:$0xff] }
  0x3c   :  { %222 = vmax.xlane.f32.xlu1 %v221_v40  ;;  %v73_v40 = vld [vmem:[%s3589_s0 + $0x208] sm:$0xff] }
  0x3d   :  { %219 = vmax.xlane.f32.xlu0 %v218_v41  ;;  %v230_v47 = vmax.f32 %v72_v22, %v73_v40  ;;  %v78_v41 = vld [vmem:[%s3589_s0 + $0x230] sm:$0xff]  ;;  %v236_v22 = vmax.f32 %v76_v53, %v77_v52  ;;  %v81_v40 = vld [vmem:[%s3589_s0 + $0x248] sm:$0xff] }
  0x3e   :  { %v239_v3 = vmax.f32 %v78_v41, %v79_v58  ;;  %v86_v53 = vld [vmem:[%s3589_s0 + $0x270] sm:$0xff]  ;;  %v84_v41 = vld [vmem:[%s3589_s0 + $0x260] sm:$0xff]  ;;  %v85_v58 = vld [vmem:[%s3589_s0 + $0x268] sm:$0xff] }
  0x40   :  { %228 = vmax.xlane.f32.xlu1 %v227_v59  ;;  %v83_v59 = vld [vmem:[%s3589_s0 + $0x258] sm:$0xff] }
  0x41   :  { %225 = vmax.xlane.f32.xlu0 %v224_v7  ;;  %v80_v7 = vld [vmem:[%s3589_s0 + $0x240] sm:$0xff] }
  0x42   :  { %v242_v52 = vmax.f32 %v80_v7, %v81_v40  ;;  %v88_v7 = vld [vmem:[%s3589_s0 + $0x280] sm:$0xff]  ;;  %v89_v40 = vld [vmem:[%s3589_s0 + $0x288] sm:$0xff] }
  0x44   :  { %234 = vmax.xlane.f32.xlu1 %v233_v46  ;;  %v245_v46 = vmax.f32 %v82_v23, %v83_v59  ;;  %v90_v23 = vld [vmem:[%s3589_s0 + $0x290] sm:$0xff]  ;;  %v91_v59 = vld [vmem:[%s3589_s0 + $0x298] sm:$0xff] }
  0x45   :  { %231 = vmax.xlane.f32.xlu0 %v230_v47  ;;  %v87_v47 = vld [vmem:[%s3589_s0 + $0x278] sm:$0xff] }
  0x48   :  { %240 = vmax.xlane.f32.xlu1 %v239_v3  ;;  %v251_v3 = vmax.f32 %v86_v53, %v87_v47  ;;  %v94_v53 = vld [vmem:[%s3589_s0 + $0x2b0] sm:$0xff]  ;;  %v95_v47 = vld [vmem:[%s3589_s0 + $0x2b8] sm:$0xff] }
  0x49   :  { %237 = vmax.xlane.f32.xlu0 %v236_v22  ;;  %v248_v22 = vmax.f32 %v84_v41, %v85_v58  ;;  %v92_v41 = vld [vmem:[%s3589_s0 + $0x2a0] sm:$0xff]  ;;  %v93_v58 = vld [vmem:[%s3589_s0 + $0x2a8] sm:$0xff] }
  0x4c   :  { %246 = vmax.xlane.f32.xlu1 %v245_v46  ;;  %v257_v46 = vmax.f32 %v90_v23, %v91_v59  ;;  %v98_v23 = vld [vmem:[%s3589_s0 + $0x2d0] sm:$0xff]  ;;  %v99_v59 = vld [vmem:[%s3589_s0 + $0x2d8] sm:$0xff] }
  0x4d   :  { %243 = vmax.xlane.f32.xlu0 %v242_v52  ;;  %v254_v52 = vmax.f32 %v88_v7, %v89_v40  ;;  %v96_v7 = vld [vmem:[%s3589_s0 + $0x2c0] sm:$0xff]  ;;  %v97_v40 = vld [vmem:[%s3589_s0 + $0x2c8] sm:$0xff] }
  0x50   :  { %252 = vmax.xlane.f32.xlu1 %v251_v3  ;;  %v263_v3 = vmax.f32 %v94_v53, %v95_v47  ;;  %v102_v53 = vld [vmem:[%s3589_s0 + $0x2f0] sm:$0xff]  ;;  %v103_v47 = vld [vmem:[%s3589_s0 + $0x2f8] sm:$0xff] }
  0x51   :  { %249 = vmax.xlane.f32.xlu0 %v248_v22  ;;  %v260_v22 = vmax.f32 %v92_v41, %v93_v58  ;;  %v100_v41 = vld [vmem:[%s3589_s0 + $0x2e0] sm:$0xff]  ;;  %v101_v58 = vld [vmem:[%s3589_s0 + $0x2e8] sm:$0xff] }
  0x54   :  { %258 = vmax.xlane.f32.xlu1 %v257_v46  ;;  %v269_v46 = vmax.f32 %v98_v23, %v99_v59  ;;  %v106_v23 = vld [vmem:[%s3589_s0 + $0x310] sm:$0xff]  ;;  %v107_v59 = vld [vmem:[%s3589_s0 + $0x318] sm:$0xff] }
  0x55   :  { %255 = vmax.xlane.f32.xlu0 %v254_v52  ;;  %v266_v52 = vmax.f32 %v96_v7, %v97_v40  ;;  %v104_v7 = vld [vmem:[%s3589_s0 + $0x300] sm:$0xff]  ;;  %v105_v40 = vld [vmem:[%s3589_s0 + $0x308] sm:$0xff] }
  0x58   :  { %264 = vmax.xlane.f32.xlu1 %v263_v3  ;;  %v275_v3 = vmax.f32 %v102_v53, %v103_v47  ;;  %v110_v53 = vld [vmem:[%s3589_s0 + $0x330] sm:$0xff]  ;;  %v111_v47 = vld [vmem:[%s3589_s0 + $0x338] sm:$0xff] }
  0x59   :  { %261 = vmax.xlane.f32.xlu0 %v260_v22  ;;  %v272_v22 = vmax.f32 %v100_v41, %v101_v58  ;;  %v108_v41 = vld [vmem:[%s3589_s0 + $0x320] sm:$0xff]  ;;  %v109_v58 = vld [vmem:[%s3589_s0 + $0x328] sm:$0xff] }
  0x5c   :  { %270 = vmax.xlane.f32.xlu1 %v269_v46  ;;  %v281_v46 = vmax.f32 %v106_v23, %v107_v59  ;;  %v114_v23 = vld [vmem:[%s3589_s0 + $0x350] sm:$0xff]  ;;  %v115_v59 = vld [vmem:[%s3589_s0 + $0x358] sm:$0xff] }
  0x5d   :  { %267 = vmax.xlane.f32.xlu0 %v266_v52  ;;  %v278_v52 = vmax.f32 %v104_v7, %v105_v40  ;;  %v112_v7 = vld [vmem:[%s3589_s0 + $0x340] sm:$0xff]  ;;  %v113_v40 = vld [vmem:[%s3589_s0 + $0x348] sm:$0xff] }
  0x60   :  { %276 = vmax.xlane.f32.xlu1 %v275_v3  ;;  %v287_v3 = vmax.f32 %v110_v53, %v111_v47  ;;  %v118_v53 = vld [vmem:[%s3589_s0 + $0x370] sm:$0xff]  ;;  %v119_v47 = vld [vmem:[%s3589_s0 + $0x378] sm:$0xff] }
  0x61   :  { %273 = vmax.xlane.f32.xlu0 %v272_v22  ;;  %v284_v22 = vmax.f32 %v108_v41, %v109_v58  ;;  %v116_v41 = vld [vmem:[%s3589_s0 + $0x360] sm:$0xff]  ;;  %v117_v58 = vld [vmem:[%s3589_s0 + $0x368] sm:$0xff] }
  0x64   :  { %282 = vmax.xlane.f32.xlu1 %v281_v46  ;;  %v293_v46 = vmax.f32 %v114_v23, %v115_v59  ;;  %v122_v23 = vld [vmem:[%s3589_s0 + $0x390] sm:$0xff]  ;;  %v123_v59 = vld [vmem:[%s3589_s0 + $0x398] sm:$0xff] }
  0x65   :  { %279 = vmax.xlane.f32.xlu0 %v278_v52  ;;  %v290_v52 = vmax.f32 %v112_v7, %v113_v40  ;;  %v120_v7 = vld [vmem:[%s3589_s0 + $0x380] sm:$0xff]  ;;  %v121_v40 = vld [vmem:[%s3589_s0 + $0x388] sm:$0xff] }
  0x68   :  { %288 = vmax.xlane.f32.xlu1 %v287_v3  ;;  %v299_v3 = vmax.f32 %v118_v53, %v119_v47  ;;  %v305_v53 = vmax.f32 %v122_v23, %v123_v59  ;;  %v302_v47 = vmax.f32 %v120_v7, %v121_v40  ;;  %v126_v23 = vld [vmem:[%s3589_s0 + $0x3b0] sm:$0xff]  ;;  %v127_v59 = vld [vmem:[%s3589_s0 + $0x3b8] sm:$0xff] }
  0x69   :  { %285 = vmax.xlane.f32.xlu0 %v284_v22  ;;  %v296_v22 = vmax.f32 %v116_v41, %v117_v58  ;;  %v311_v28 = vmax.f32 %v126_v23, %v127_v59  ;;  %v131_v40 = vld [vmem:[%s3589_s0 + $0x3d8] sm:$0xff] }
  0x6c   :  { %294 = vmax.xlane.f32.xlu1 %v293_v46  ;;  %v132_v46 = vld [vmem:[%s3589_s0 + $0x3e0] sm:$0x1f] }
  0x6d   :  { %291 = vmax.xlane.f32.xlu0 %v290_v52  ;;  %v133_v52 = vld [vmem:[%s3589_s0 + $0x3e8] sm:$0x1f]  ;;  %v321_v41 = vsel %vm320_vm0, %v132_v46, -inf  ;;  %v317_v46 = vmax.f32 %v130_v29, %v131_v40 }
  0x6e   :  { %v322_v58 = vsel %vm320_vm0, %v133_v52, -inf }
  0x6f   :  { %v323_v35 = vmax.f32 %v321_v41, %v322_v58 }
  0x70   :  { %300 = vmax.xlane.f32.xlu1 %v299_v3  ;;  %v128_v3 = vld [vmem:[%s3589_s0 + $0x3c0] sm:$0xff] }
  0x71   :  { %297 = vmax.xlane.f32.xlu0 %v296_v22  ;;  %v129_v22 = vld [vmem:[%s3589_s0 + $0x3c8] sm:$0xff] }
  0x72   :  { %v314_v7 = vmax.f32 %v128_v3, %v129_v22 }
  0x74   :  { %306 = vmax.xlane.f32.xlu1 %v305_v53 }
  0x75   :  { %303 = vmax.xlane.f32.xlu0 %v302_v47 }
  0x78   :  { %324 = vmax.xlane.f32.xlu1 %v323_v35 }
  0x79   :  { %309 = vmax.xlane.f32.xlu0 %v308_v34 }
  0x7c   :  { %315 = vmax.xlane.f32.xlu1 %v314_v7 }
  0x7d   :  { %312 = vmax.xlane.f32.xlu0 %v311_v28 }
  0x81   :  { %318 = vmax.xlane.f32.xlu0 %v317_v46 }
  0x8d   :  { %v142_v52 = vpop.xlane.xlu1 %141 }
  0x8e   :  { %v136_v53 = vpop.xlane.xlu0 %135 }
  0x91   :  { %v148_v47 = vpop.xlane.xlu1 %147 }
  0x92   :  { %v139_v41 = vpop.xlane.xlu0 %138  ;;  %v326_v6 = vmax.f32 %v136_v53, %v148_v47 }
  0x95   :  { %v154_v35 = vpop.xlane.xlu1 %153 }
  0x96   :  { %v151_v58 = vpop.xlane.xlu0 %150  ;;  %v328_v5 = vmax.f32 %v142_v52, %v154_v35 }
  0x97   :  { %v327_v14 = vmax.f32 %v139_v41, %v151_v58 }
  0x99   :  { %v157_v34 = vpop.xlane.xlu1 %156 }
  0x9a   :  { %v145_v3 = vpop.xlane.xlu0 %144 }
  0x9b   :  { %v329_v0 = vmax.f32 %v145_v3, %v157_v34 }
  0x9d   :  { %v163_v22 = vpop.xlane.xlu1 %162 }
  0x9e   :  { %v160_v23 = vpop.xlane.xlu0 %159  ;;  %v331_v21 = vmax.f32 %v327_v14, %v163_v22 }
  0x9f   :  { %v330_v4 = vmax.f32 %v326_v6, %v160_v23 }
  0xa1   :  { %v169_v59 = vpop.xlane.xlu1 %168 }
  0xa2   :  { %v166_v11 = vpop.xlane.xlu0 %165  ;;  %v333_v8 = vmax.f32 %v329_v0, %v169_v59 }
  0xa3   :  { %v332_v2 = vmax.f32 %v328_v5, %v166_v11 }
  0xa5   :  { %v175_v10 = vpop.xlane.xlu1 %174 }
  0xa6   :  { %v172_v17 = vpop.xlane.xlu0 %171  ;;  %v335_v9 = vmax.f32 %v331_v21, %v175_v10 }
  0xa9   :  { %v181_v16 = vpop.xlane.xlu1 %180 }
  0xaa   :  { %v178_v61 = vpop.xlane.xlu0 %177  ;;  %v337_v58 = vmax.f32 %v333_v8, %v181_v16 }
  0xad   :  { %v187_v7 = vpop.xlane.xlu1 %186 }
  0xae   :  { %v184_v28 = vpop.xlane.xlu0 %183 }
  0xb1   :  { %v193_v29 = vpop.xlane.xlu1 %192 }
  0xb2   :  { %v190_v40 = vpop.xlane.xlu0 %189  ;;  %v341_v14 = vmax.f32 %v337_v58, %v193_v29 }
  0xb5   :  { %v199_v46 = vpop.xlane.xlu1 %198 }
  0xb6   :  { %v196_v60 = vpop.xlane.xlu0 %195 }
  0xb9   :  { %v205_v63 = vpop.xlane.xlu1 %204 }
  0xba   :  { %v202_v62 = vpop.xlane.xlu0 %201  ;;  %v345_v6 = vmax.f32 %v341_v14, %v205_v63  ;;  %v3803_v14 = vld [vmem:[#allocation9_spill] sm:$0xff] }
  0xbd   :  { %v211_v55 = vpop.xlane.xlu1 %210 }
  0xbe   :  { %v208_v54 = vpop.xlane.xlu0 %207 }
  0xc1   :  { %v217_v57 = vpop.xlane.xlu1 %216 }
  0xc2   :  { %v214_v56 = vpop.xlane.xlu0 %213  ;;  %v349_v21 = vmax.f32 %v345_v6, %v217_v57  ;;  %v3805_v6 = vld [vmem:[#allocation5_spill] sm:$0xff] }
  0xc5   :  { %v223_v49 = vpop.xlane.xlu1 %222 }
  0xc6   :  { %v220_v48 = vpop.xlane.xlu0 %219 }
  0xc9   :  { %v229_v51 = vpop.xlane.xlu1 %228 }
  0xca   :  { %v226_v50 = vpop.xlane.xlu0 %225 }
  0xcd   :  { %v235_v43 = vpop.xlane.xlu1 %234 }
  0xce   :  { %v232_v42 = vpop.xlane.xlu0 %231 }
  0xd1   :  { %v241_v45 = vpop.xlane.xlu1 %240 }
  0xd2   :  { %v238_v44 = vpop.xlane.xlu0 %237 }
  0xd5   :  { %v247_v37 = vpop.xlane.xlu1 %246 }
  0xd6   :  { %v244_v36 = vpop.xlane.xlu0 %243 }
  0xd9   :  { %v2180_v39 = vpop.xlane.xlu1 %252 }
  0xda   :  { %3796 = vst [vmem:[#allocation62_spill] sm:$0xff] %v2180_v39  ;;  %v250_v38 = vpop.xlane.xlu0 %249  ;;  %v334_v39 = vmax.f32 %v330_v4, %v172_v17 }
  0xdc   :  { %v338_v47 = vmax.f32 %v334_v39, %v184_v28 }
  0xdd   :  { %v259_v31 = vpop.xlane.xlu1 %258 }
  0xde   :  { %v256_v30 = vpop.xlane.xlu0 %255  ;;  %v342_v22 = vmax.f32 %v338_v47, %v196_v60 }
  0xe0   :  { %v346_v23 = vmax.f32 %v342_v22, %v208_v54 }
  0xe1   :  { %v265_v33 = vpop.xlane.xlu1 %264 }
  0xe2   :  { %v262_v32 = vpop.xlane.xlu0 %261  ;;  %v350_v0 = vmax.f32 %v346_v23, %v220_v48 }
  0xe4   :  { %v354_v8 = vmax.f32 %v350_v0, %v232_v42  ;;  %v3806_v0 = vld [vmem:[#allocation2_spill] sm:$0xff] }
  0xe5   :  { %v271_v25 = vpop.xlane.xlu1 %270 }
  0xe6   :  { %v268_v24 = vpop.xlane.xlu0 %267  ;;  %v358_v16 = vmax.f32 %v354_v8, %v244_v36 }
  0xe8   :  { %v362_v54 = vmax.f32 %v358_v16, %v256_v30  ;;  %v3809_v16 = vld [vmem:[#allocation17_spill] sm:$0xff] }
  0xe9   :  { %v2182_v27 = vpop.xlane.xlu1 %276 }
  0xea   :  { %3797 = vst [vmem:[#allocation63_spill] sm:$0xff] %v2182_v27  ;;  %v274_v26 = vpop.xlane.xlu0 %273  ;;  %v336_v27 = vmax.f32 %v332_v2, %v178_v61  ;;  %v353_v61 = vmax.f32 %v349_v21, %v229_v51  ;;  %v366_v48 = vmax.f32 %v362_v54, %v268_v24 }
  0xec   :  { %v340_v53 = vmax.f32 %v336_v27, %v190_v40 }
  0xed   :  { %v283_v18 = vpop.xlane.xlu1 %282 }
  0xee   :  { %v280_v19 = vpop.xlane.xlu0 %279  ;;  %v344_v3 = vmax.f32 %v340_v53, %v202_v62 }
  0xef   :  { %v370_v42 = vmax.f32 %v366_v48, %v280_v19  ;;  %v3812_v48 = vld [vmem:[#allocation12_spill] sm:$0xff] }
  0xf0   :  { %v348_v5 = vmax.f32 %v344_v3, %v214_v56  ;;  %v3804_v3 = vld [vmem:[#allocation4_spill] sm:$0xff] }
  0xf1   :  { %v289_v12 = vpop.xlane.xlu1 %288 }
  0xf2   :  { %v286_v13 = vpop.xlane.xlu0 %285  ;;  %v352_v4 = vmax.f32 %v348_v5, %v226_v50 }
  0xf4   :  { %v356_v39 = vmax.f32 %v352_v4, %v238_v44 }
  0xf5   :  { %v295_v1 = vpop.xlane.xlu1 %294 }
  0xf6   :  { %v2184_v15 = vpop.xlane.xlu0 %291  ;;  %v360_v17 = vmax.f32 %v356_v39, %v250_v38  ;;  %v3808_v39 = vld [vmem:[#allocation16_spill] sm:$0xff] }
  0xf7   :  { %3798 = vst [vmem:[#allocation64_spill] sm:$0xff] %v2184_v15  ;;  %v339_v15 = vmax.f32 %v335_v9, %v187_v7  ;;  %v3800_v7 = vld [vmem:[#allocation63_spill] sm:$0xff] }
  0xf8   :  { %v364_v56 = vmax.f32 %v360_v17, %v262_v32 }
  0xf9   :  { %v343_v35 = vmax.f32 %v339_v15, %v199_v46  ;;  %v301_v52 = vpop.xlane.xlu1 %300  ;;  %v357_v15 = vmax.f32 %v353_v61, %v241_v45 }
  0xfa   :  { %v298_v20 = vpop.xlane.xlu0 %297  ;;  %v368_v50 = vmax.f32 %v364_v56, %v274_v26  ;;  %v3811_v56 = vld [vmem:[#allocation7_spill] sm:$0xff] }
  0xfb   :  { %v347_v34 = vmax.f32 %v343_v35, %v211_v55  ;;  %v3799_v55 = vld [vmem:[#allocation62_spill] sm:$0xff] }
  0xfc   :  { %v361_v63 = vmax.f32 %v357_v15, %v3799_v55  ;;  %v372_v44 = vmax.f32 %v368_v50, %v286_v13  ;;  %v3810_v55 = vld [vmem:[#allocation6_spill] sm:$0xff] }
  0xfd   :  { %v351_v11 = vmax.f32 %v347_v34, %v223_v49  ;;  %v307_v9 = vpop.xlane.xlu1 %306 }
  0xfe   :  { %v304_v41 = vpop.xlane.xlu0 %303  ;;  %v365_v57 = vmax.f32 %v361_v63, %v265_v33  ;;  %v3801_v38 = vld [vmem:[#allocation64_spill] sm:$0xff]  ;;  %v376_v28 = vmax.f32 %v372_v44, %v298_v20  ;;  %v3814_v44 = vld [vmem:[#allocation10_spill] sm:$0xff] }
  0xff   :  { %v355_v2 = vmax.f32 %v351_v11, %v235_v43 }
 0x100   :  { %v369_v51 = vmax.f32 %v365_v57, %v3800_v7  ;;  %v3813_v7 = vld [vmem:[#allocation13_spill] sm:$0xff] }
 0x101   :  { %v359_v27 = vmax.f32 %v355_v2, %v247_v37  ;;  %v325_v59 = vpop.xlane.xlu1 %324 }
 0x102   :  { %v310_v10 = vpop.xlane.xlu0 %309  ;;  %v373_v36 = vmax.f32 %v369_v51, %v289_v12  ;;  %v384_v24 = vsel %vm320_vm0, %v325_v59, -inf }
 0x103   :  { %v363_v60 = vmax.f32 %v359_v27, %v259_v31  ;;  %v374_v31 = vmax.f32 %v370_v42, %v3801_v38 }
 0x104   :  { %v377_v30 = vmax.f32 %v373_v36, %v301_v52  ;;  %v3802_v52 = vld [vmem:[#allocation8_spill] sm:$0xff]  ;;  %v3815_v36 = vld [vmem:[#allocation11_spill] sm:$0xff] }
 0x105   :  { %v367_v49 = vmax.f32 %v363_v60, %v271_v25  ;;  %v316_v40 = vpop.xlane.xlu1 %315  ;;  %v378_v32 = vmax.f32 %v374_v31, %v304_v41  ;;  %v380_v25 = vmax.f32 %v376_v28, %v310_v10  ;;  %v3816_v28 = vld [vmem:[#allocation14_spill] sm:$0xff] }
 0x106   :  { %v313_v62 = vpop.xlane.xlu0 %312 }
 0x107   :  { %v371_v43 = vmax.f32 %v367_v49, %v283_v18  ;;  %v382_v26 = vmax.f32 %v378_v32, %v316_v40  ;;  %v381_v18 = vmax.f32 %v377_v30, %v313_v62  ;;  %v385_v33 = vmax.f32 %v380_v25, %v384_v24  ;;  %v3817_v30 = vld [vmem:[#allocation15_spill] sm:$0xff] }
 0x109   :  { %v375_v37 = vmax.f32 %v371_v43, %v295_v1  ;;  %v387_v19 = vmax.f32 %v385_v33, %v381_v18  ;;  %v3819_v18 = vld [vmem:[#allocation21_spill] sm:$0xff] }
 0x10a   :  { %v319_v45 = vpop.xlane.xlu0 %318 }
 0x10b   :  { %v379_v29 = vmax.f32 %v375_v37, %v307_v9  ;;  %v3807_v9 = vld [vmem:[#allocation3_spill] sm:$0xff] }
 0x10d   :  { %v383_v46 = vmax.f32 %v379_v29, %v319_v45 }
 0x10f   :  { %v386_v58 = vmax.f32 %v382_v26, %v383_v46  ;;  %v3818_v46 = vld [vmem:[#allocation20_spill] sm:$0xff] }
 0x111   :  { %v388_v13 = vmax.f32 %v386_v58, %v387_v19  ;;  %v3820_v19 = vld [vmem:[#allocation18_spill] sm:$0xff] }
 0x113   :  { %v389_v1 = vrot.slane %v388_v13, 4 }
 0x115   :  { %v390_v47 = vmax.f32 %v388_v13, %v389_v1 }
 0x117   :  { %v391_v12 = vrot.slane %v390_v47, 2 }
 0x119   :  { %v392_v53 = vmax.f32 %v390_v47, %v391_v12  ;;  %v3821_v47 = vld [vmem:[#allocation19_spill] sm:$0xff] }
 0x11b   :  { %v393_v35 = vrot.slane %v392_v53, 1 }
 0x11d   :  { %v2190_v20 = vmax.f32 %v392_v53, %v393_v35  ;;  %v3822_v35 = vld [vmem:[#allocation24_spill] sm:$0xff] }
 0x11f   :  { %v397_v41 = vsub.f32 %v3802_v52, %v2190_v20  ;;  %v398_v22 = vsub.f32 %v3803_v14, %v2190_v20  ;;  %v395_v34 = vsub.f32 %v3804_v3, %v2190_v20  ;;  %v396_v23 = vsub.f32 %v3805_v6, %v2190_v20  ;;  %v3823_v14 = vld [vmem:[#allocation25_spill] sm:$0xff] }
 0x120   :  { %v399_v4 = vsub.f32 %v3806_v0, %v2190_v20  ;;  %v400_v61 = vsub.f32 %v3807_v9, %v2190_v20  ;;  %v401_v27 = vsub.f32 %v3808_v39, %v2190_v20  ;;  %v402_v17 = vsub.f32 %v3809_v16, %v2190_v20 }
 0x121   :  { %v525_v5 = vmul.f32 1.442695, %v397_v41  ;;  %v527_v11 = vmul.f32 1.442695, %v398_v22  ;;  %v521_v10 = vmul.f32 1.442695, %v395_v34  ;;  %v403_v63 = vsub.f32 %v3810_v55, %v2190_v20 }
 0x122   :  { %v523_v21 = vmul.f32 1.442695, %v396_v23  ;;  %v529_v54 = vmul.f32 1.442695, %v399_v4  ;;  %v404_v49 = vsub.f32 %v3811_v56, %v2190_v20  ;;  %v531_v59 = vmul.f32 1.442695, %v400_v61 }
 0x123   :  { %1290 = vpow2.f32 %v525_v5  ;;  %v405_v50 = vsub.f32 %v3812_v48, %v2190_v20  ;;  %v533_v43 = vmul.f32 1.442695, %v401_v27  ;;  %v406_v51 = vsub.f32 %v3813_v7, %v2190_v20  ;;  %v3824_v34 = vld [vmem:[#allocation22_spill] sm:$0xff]  ;;  %v3825_v5 = vld [vmem:[#allocation23_spill] sm:$0xff]  ;;  %v3827_v61 = vld [vmem:[#allocation29_spill] sm:$0xff] }
 0x124   :  { %1292 = vpow2.f32 %v527_v11  ;;  %v535_v42 = vmul.f32 1.442695, %v402_v17  ;;  %v407_v37 = vsub.f32 %v3814_v44, %v2190_v20  ;;  %v537_v45 = vmul.f32 1.442695, %v403_v63  ;;  %v3828_v17 = vld [vmem:[#allocation26_spill] sm:$0xff]  ;;  %v3831_v7 = vld [vmem:[#allocation33_spill] sm:$0xff] }
 0x125   :  { %1294 = vpow2.f32 %v521_v10  ;;  %v408_v38 = vsub.f32 %v3815_v36, %v2190_v20  ;;  %v539_v31 = vmul.f32 1.442695, %v404_v49  ;;  %v409_v29 = vsub.f32 %v3816_v28, %v2190_v20 }
 0x126   :  { %1296 = vpow2.f32 %v523_v21  ;;  %v541_v40 = vmul.f32 1.442695, %v405_v50  ;;  %v410_v32 = vsub.f32 %v3817_v30, %v2190_v20  ;;  %v543_v25 = vmul.f32 1.442695, %v406_v51  ;;  %v3826_v21 = vld [vmem:[#allocation28_spill] sm:$0xff] }
 0x127   :  { %1298 = vpow2.f32 %v529_v54  ;;  %v411_v24 = vsub.f32 %v3818_v46, %v2190_v20  ;;  %v545_v26 = vmul.f32 1.442695, %v407_v37  ;;  %v412_v33 = vsub.f32 %v3819_v18, %v2190_v20  ;;  %v3829_v54 = vld [vmem:[#allocation27_spill] sm:$0xff]  ;;  %v3832_v37 = vld [vmem:[#allocation30_spill] sm:$0xff]  ;;  %v3835_v18 = vld [vmem:[#allocation37_spill] sm:$0xff] }
 0x128   :  { %1300 = vpow2.f32 %v531_v59  ;;  %v547_v58 = vmul.f32 1.442695, %v408_v38  ;;  %v413_v13 = vsub.f32 %v3820_v19, %v2190_v20  ;;  %v549_v1 = vmul.f32 1.442695, %v409_v29  ;;  %v3834_v29 = vld [vmem:[#allocation36_spill] sm:$0xff] }
 0x129   :  { %1302 = vpow2.f32 %v533_v43  ;;  %v414_v12 = vsub.f32 %v3821_v47, %v2190_v20  ;;  %v551_v53 = vmul.f32 1.442695, %v410_v32  ;;  %v415_v52 = vsub.f32 %v3822_v35, %v2190_v20 }
 0x12a   :  { %1304 = vpow2.f32 %v535_v42  ;;  %v553_v41 = vmul.f32 1.442695, %v411_v24  ;;  %v416_v22 = vsub.f32 %v3823_v14, %v2190_v20  ;;  %v555_v3 = vmul.f32 1.442695, %v412_v33 }
 0x12b   :  { %1306 = vpow2.f32 %v537_v45  ;;  %v417_v6 = vsub.f32 %v3824_v34, %v2190_v20  ;;  %v557_v23 = vmul.f32 1.442695, %v413_v13  ;;  %v418_v11 = vsub.f32 %v3825_v5, %v2190_v20  ;;  %v3836_v13 = vld [vmem:[#allocation34_spill] sm:$0xff]  ;;  %v3839_v5 = vld [vmem:[#allocation41_spill] sm:$0xff] }
 0x12c   :  { %1308 = vpow2.f32 %v539_v31  ;;  %v559_v10 = vmul.f32 1.442695, %v414_v12  ;;  %v419_v0 = vsub.f32 %v3826_v21, %v2190_v20  ;;  %v561_v4 = vmul.f32 1.442695, %v415_v52  ;;  %v3833_v31 = vld [vmem:[#allocation31_spill] sm:$0xff]  ;;  %v3838_v52 = vld [vmem:[#allocation40_spill] sm:$0xff] }
 0x12d   :  { %1310 = vpow2.f32 %v541_v40  ;;  %v420_v39 = vsub.f32 %v3827_v61, %v2190_v20  ;;  %v563_v27 = vmul.f32 1.442695, %v416_v22  ;;  %v565_v55 = vmul.f32 1.442695, %v417_v6 }
 0x12e   :  { %1312 = vpow2.f32 %v543_v25  ;;  %v422_v56 = vsub.f32 %v3829_v54, %v2190_v20  ;;  %v567_v49 = vmul.f32 1.442695, %v418_v11  ;;  %v569_v50 = vmul.f32 1.442695, %v419_v0  ;;  %v3840_v0 = vld [vmem:[#allocation38_spill] sm:$0xff] }
 0x12f   :  { %1314 = vpow2.f32 %v545_v26  ;;  %v424_v51 = vsub.f32 %v3831_v7, %v2190_v20  ;;  %v571_v42 = vmul.f32 1.442695, %v420_v39  ;;  %v425_v45 = vsub.f32 %v3832_v37, %v2190_v20  ;;  %v3843_v7 = vld [vmem:[#allocation45_spill] sm:$0xff] }
 0x130   :  { %v2202_v2 = vpop.eup %1290  ;;  %1316 = vpow2.f32 %v547_v58  ;;  %v426_v28 = vsub.f32 %v3833_v31, %v2190_v20  ;;  %v427_v40 = vsub.f32 %v3834_v29, %v2190_v20  ;;  %v575_v30 = vmul.f32 1.442695, %v422_v56  ;;  %v3845_v29 = vld [vmem:[#allocation43_spill] sm:$0xff] }
 0x131   :  { %v2206_v8 = vpop.eup %1292  ;;  %1318 = vpow2.f32 %v549_v1  ;;  %v428_v33 = vsub.f32 %v3835_v18, %v2190_v20  ;;  %v579_v58 = vmul.f32 1.442695, %v424_v51  ;;  %v429_v1 = vsub.f32 %v3836_v13, %v2190_v20 }
 0x132   :  { %v2210_v15 = vpop.eup %1294  ;;  %v776_v60 = vadd.f32 %v2206_v8, %v2202_v2  ;;  %1320 = vpow2.f32 %v551_v53  ;;  %v581_v47 = vmul.f32 1.442695, %v425_v45  ;;  %v3837_v53 = vld [vmem:[#allocation35_spill] sm:$0xff]  ;;  %v583_v14 = vmul.f32 1.442695, %v426_v28  ;;  %v3844_v45 = vld [vmem:[#allocation42_spill] sm:$0xff] }
 0x133   :  { %v2216_v62 = vpop.eup %1296  ;;  %1322 = vpow2.f32 %v553_v41  ;;  %v430_v35 = vsub.f32 %v3837_v53, %v2190_v20  ;;  %v431_v41 = vsub.f32 %v3838_v52, %v2190_v20  ;;  %v432_v11 = vsub.f32 %v3839_v5, %v2190_v20  ;;  %v3848_v52 = vld [vmem:[#allocation46_spill] sm:$0xff]  ;;  %v3850_v5 = vld [vmem:[#allocation52_spill] sm:$0xff] }
 0x134   :  { %777 = vadd.xlane.f32.xlu0 %v776_v60  ;;  %v773_v57 = vadd.f32 %v2216_v62, %v2210_v15  ;;  %v2254_v9 = vpop.eup %1298  ;;  %1324 = vpow2.f32 %v555_v3  ;;  %v421_v60 = vsub.f32 %v3828_v17, %v2190_v20  ;;  %v585_v3 = vmul.f32 1.442695, %v427_v40 }
 0x135   :  { %v2258_v16 = vpop.eup %1300  ;;  %1326 = vpow2.f32 %v557_v23  ;;  %v589_v61 = vmul.f32 1.442695, %v429_v1  ;;  %v591_v54 = vmul.f32 1.442695, %v430_v35  ;;  %v436_v51 = vsub.f32 %v3843_v7, %v2190_v20  ;;  %v3847_v1 = vld [vmem:[#allocation49_spill] sm:$0xff] }
 0x136   :  { %774 = vadd.xlane.f32.xlu1 %v773_v57  ;;  %v2262_v63 = vpop.eup %1302  ;;  %1328 = vpow2.f32 %v559_v10  ;;  %v3830_v57 = vld [vmem:[#allocation32_spill] sm:$0xff]  ;;  %v573_v36 = vmul.f32 1.442695, %v421_v60  ;;  %v779_v24 = vadd.f32 %v2258_v16, %v2254_v9  ;;  %v587_v10 = vmul.f32 1.442695, %v428_v33 }
 0x137   :  { %v2266_v59 = vpop.eup %1304  ;;  %v423_v48 = vsub.f32 %v3830_v57, %v2190_v20  ;;  %1330 = vpow2.f32 %v561_v4  ;;  %v433_v4 = vsub.f32 %v3840_v0, %v2190_v20  ;;  %v3842_v60 = vld [vmem:[#allocation44_spill] sm:$0xff]  ;;  %v438_v40 = vsub.f32 %v3845_v29, %v2190_v20 }
 0x138   :  { %v2270_v43 = vpop.eup %1306  ;;  %1332 = vpow2.f32 %v563_v27  ;;  %v782_v46 = vadd.f32 %v2266_v59, %v2262_v63  ;;  %v3841_v27 = vld [vmem:[#allocation39_spill] sm:$0xff]  ;;  %v603_v53 = vmul.f32 1.442695, %v436_v51 }
 0x139   :  { %v2274_v44 = vpop.eup %1308  ;;  %1334 = vpow2.f32 %v565_v55  ;;  %v577_v25 = vmul.f32 1.442695, %v423_v48  ;;  %v434_v17 = vsub.f32 %v3841_v27, %v2190_v20  ;;  %v435_v55 = vsub.f32 %v3842_v60, %v2190_v20  ;;  %v3851_v60 = vld [vmem:[#allocation53_spill] sm:$0xff] }
 0x13a   :  { %v2278_v38 = vpop.eup %1310  ;;  %1336 = vpow2.f32 %v567_v49  ;;  %783 = vadd.xlane.f32.xlu0 %v782_v46  ;;  %780 = vadd.xlane.f32.xlu1 %v779_v24  ;;  %v785_v6 = vadd.f32 %v2274_v44, %v2270_v43  ;;  %v593_v49 = vmul.f32 1.442695, %v431_v41  ;;  %v597_v31 = vmul.f32 1.442695, %v433_v4 }
 0x13b   :  { %v2284_v32 = vpop.eup %1312  ;;  %1338 = vpow2.f32 %v569_v50  ;;  %v599_v46 = vmul.f32 1.442695, %v434_v17  ;;  %v601_v18 = vmul.f32 1.442695, %v435_v55  ;;  %v441_v41 = vsub.f32 %v3848_v52, %v2190_v20 }
 0x13c   :  { %v2290_v26 = vpop.eup %1314  ;;  %1340 = vpow2.f32 %v571_v42  ;;  %v788_v34 = vadd.f32 %v2284_v32, %v2278_v38  ;;  %v595_v42 = vmul.f32 1.442695, %v432_v11  ;;  %v443_v11 = vsub.f32 %v3850_v5, %v2190_v20  ;;  %v3858_v5 = vld [vmem:[#allocation59_spill] sm:$0xff] }
 0x13d   :  { %v2294_v19 = vpop.eup %1316  ;;  %1342 = vpow2.f32 %v573_v36  ;;  %v437_v36 = vsub.f32 %v3844_v45, %v2190_v20  ;;  %v444_v55 = vsub.f32 %v3851_v60, %v2190_v20  ;;  %v613_v7 = vmul.f32 1.442695, %v441_v41 }
 0x13e   :  { %v2298_v12 = vpop.eup %1318  ;;  %1344 = vpow2.f32 %v575_v30  ;;  %789 = vadd.xlane.f32.xlu0 %v788_v34  ;;  %786 = vadd.xlane.f32.xlu1 %v785_v6  ;;  %v791_v48 = vadd.f32 %v2294_v19, %v2290_v26  ;;  %v3846_v30 = vld [vmem:[#allocation48_spill] sm:$0xff]  ;;  %v3849_v34 = vld [vmem:[#allocation47_spill] sm:$0xff] }
 0x13f   :  { %v2304_v22 = vpop.eup %1320  ;;  %1346 = vpow2.f32 %v577_v25  ;;  %v439_v25 = vsub.f32 %v3846_v30, %v2190_v20  ;;  %v442_v6 = vsub.f32 %v3849_v34, %v2190_v20  ;;  %v617_v30 = vmul.f32 1.442695, %v443_v11  ;;  %v3857_v34 = vld [vmem:[#allocation55_spill] sm:$0xff] }
 0x140   :  { %v2310_v23 = vpop.eup %1322  ;;  %1348 = vpow2.f32 %v579_v58  ;;  %v794_v57 = vadd.f32 %v2304_v22, %v2298_v12  ;;  %v451_v11 = vsub.f32 %v3858_v5, %v2190_v20 }
 0x141   :  { %v2314_v21 = vpop.eup %1324  ;;  %1350 = vpow2.f32 %v581_v47  ;;  %v440_v47 = vsub.f32 %v3847_v1, %v2190_v20  ;;  %v609_v4 = vmul.f32 1.442695, %v439_v25  ;;  %v615_v29 = vmul.f32 1.442695, %v442_v6 }
 0x142   :  { %v2318_v39 = vpop.eup %1326  ;;  %1352 = vpow2.f32 %v583_v14  ;;  %795 = vadd.xlane.f32.xlu0 %v794_v57  ;;  %792 = vadd.xlane.f32.xlu1 %v791_v48  ;;  %v797_v58 = vadd.f32 %v2314_v21, %v2310_v23  ;;  %v605_v14 = vmul.f32 1.442695, %v437_v36  ;;  %v3852_v57 = vld [vmem:[#allocation50_spill] sm:$0xff]  ;;  %v3854_v36 = vld [vmem:[#allocation56_spill] sm:$0xff]  ;;  %v619_v1 = vmul.f32 1.442695, %v444_v55 }
 0x143   :  { %v2324_v56 = vpop.eup %1328  ;;  %1354 = vpow2.f32 %v585_v3  ;;  %v445_v48 = vsub.f32 %v3852_v57, %v2190_v20  ;;  %v450_v6 = vsub.f32 %v3857_v34, %v2190_v20  ;;  %v1545_v34 = vld [vmem:[%s3589_s0 + $0x1e8] sm:$0xff] }
 0x144   :  { %v2330_v50 = vpop.eup %1330  ;;  %1356 = vpow2.f32 %v587_v10  ;;  %v800_v33 = vadd.f32 %v2324_v56, %v2318_v39  ;;  %v607_v10 = vmul.f32 1.442695, %v438_v40  ;;  %v456_v5 = vsub.f32 %v1545_v34, %v2190_v20  ;;  %v1549_v34 = vld [vmem:[%s3589_s0 + $0x208] sm:$0xff] }
 0x145   :  { %v2334_v37 = vpop.eup %1332  ;;  %1358 = vpow2.f32 %v589_v61  ;;  %v621_v41 = vmul.f32 1.442695, %v445_v48 }
 0x146   :  { %v2338_v28 = vpop.eup %1334  ;;  %1360 = vpow2.f32 %v591_v54  ;;  %801 = vadd.xlane.f32.xlu0 %v800_v33  ;;  %798 = vadd.xlane.f32.xlu1 %v797_v58  ;;  %v803_v27 = vadd.f32 %v2334_v37, %v2330_v50  ;;  %v611_v54 = vmul.f32 1.442695, %v440_v47  ;;  %v3855_v33 = vld [vmem:[#allocation57_spill] sm:$0xff] }
 0x147   :  { %v2344_v24 = vpop.eup %1336  ;;  %1362 = vpow2.f32 %v593_v49  ;;  %v448_v58 = vsub.f32 %v3855_v33, %v2190_v20  ;;  %v631_v33 = vmul.f32 1.442695, %v450_v6 }
 0x148   :  { %v2350_v13 = vpop.eup %1338  ;;  %1364 = vpow2.f32 %v595_v42  ;;  %v806_v61 = vadd.f32 %v2344_v24, %v2338_v28  ;;  %v3853_v42 = vld [vmem:[#allocation51_spill] sm:$0xff] }
 0x149   :  { %v2354_v35 = vpop.eup %1340  ;;  %1366 = vpow2.f32 %v597_v31  ;;  %v446_v45 = vsub.f32 %v3853_v42, %v2190_v20  ;;  %v447_v31 = vsub.f32 %v3854_v36, %v2190_v20  ;;  %v627_v48 = vmul.f32 1.442695, %v448_v58  ;;  %v3860_v42 = vld [vmem:[#allocation58_spill] sm:$0xff] }
 0x14a   :  { %v2358_v3 = vpop.eup %1342  ;;  %1368 = vpow2.f32 %v599_v46  ;;  %807 = vadd.xlane.f32.xlu0 %v806_v61  ;;  %804 = vadd.xlane.f32.xlu1 %v803_v27  ;;  %v809_v46 = vadd.f32 %v2354_v35, %v2350_v13 }
 0x14b   :  { %v2364_v0 = vpop.eup %1344  ;;  %1370 = vpow2.f32 %v601_v18  ;;  %v625_v61 = vmul.f32 1.442695, %v447_v31 }
 0x14c   :  { %v2370_v17 = vpop.eup %1346  ;;  %1372 = vpow2.f32 %v603_v53  ;;  %v812_v25 = vadd.f32 %v2364_v0, %v2358_v3  ;;  %v3856_v53 = vld [vmem:[#allocation54_spill] sm:$0xff] }
 0x14d   :  { %v2374_v49 = vpop.eup %1348  ;;  %1374 = vpow2.f32 %v605_v14  ;;  %v449_v52 = vsub.f32 %v3856_v53, %v2190_v20 }
 0x14e   :  { %v2378_v51 = vpop.eup %1350  ;;  %1376 = vpow2.f32 %v607_v10  ;;  %813 = vadd.xlane.f32.xlu0 %v812_v25  ;;  %810 = vadd.xlane.f32.xlu1 %v809_v46  ;;  %v623_v10 = vmul.f32 1.442695, %v446_v45  ;;  %v815_v60 = vadd.f32 %v2374_v49, %v2370_v17  ;;  %v453_v45 = vsub.f32 %v3860_v42, %v2190_v20  ;;  %v3862_v25 = vld [vmem:[#allocation61_spill] sm:$0xff] }
 0x14f   :  { %v2384_v40 = vpop.eup %1352  ;;  %1378 = vpow2.f32 %v609_v4  ;;  %v629_v36 = vmul.f32 1.442695, %v449_v52  ;;  %v455_v46 = vsub.f32 %v3862_v25, %v2190_v20 }
 0x150   :  { %v2390_v18 = vpop.eup %1354  ;;  %1380 = vpow2.f32 %v611_v54  ;;  %v818_v27 = vadd.f32 %v2384_v40, %v2378_v51  ;;  %v3859_v54 = vld [vmem:[#allocation60_spill] sm:$0xff] }
 0x151   :  { %v2394_v47 = vpop.eup %1356  ;;  %1382 = vpow2.f32 %v613_v7  ;;  %v452_v57 = vsub.f32 %v3859_v54, %v2190_v20  ;;  %v1547_v54 = vld [vmem:[%s3589_s0 + $0x1f8] sm:$0xff] }
 0x152   :  { %v2398_v14 = vpop.eup %1358  ;;  %1384 = vpow2.f32 %v615_v29  ;;  %819 = vadd.xlane.f32.xlu0 %v818_v27  ;;  %816 = vadd.xlane.f32.xlu1 %v815_v60  ;;  %v1544_v29 = vld [vmem:[%s3589_s0 + $0x1d8] sm:$0xff]  ;;  %v821_v52 = vadd.f32 %v2394_v47, %v2390_v18  ;;  %v637_v27 = vmul.f32 1.442695, %v453_v45 }
 0x153   :  { %v2404_v4 = vpop.eup %1360  ;;  %1386 = vpow2.f32 %v617_v30  ;;  %v454_v30 = vsub.f32 %v1544_v29, %v2190_v20  ;;  %v635_v6 = vmul.f32 1.442695, %v452_v57  ;;  %v458_v57 = vsub.f32 %v1547_v54, %v2190_v20 }
 0x154   :  { %v2410_v55 = vpop.eup %1362  ;;  %1388 = vpow2.f32 %v619_v1  ;;  %v633_v1 = vmul.f32 1.442695, %v451_v11  ;;  %v824_v53 = vadd.f32 %v2404_v4, %v2398_v14  ;;  %v1546_v11 = vld [vmem:[%s3589_s0 + $0x1f0] sm:$0xff] }
 0x155   :  { %v2414_v7 = vpop.eup %1364  ;;  %1390 = vpow2.f32 %v621_v41  ;;  %v639_v29 = vmul.f32 1.442695, %v454_v30  ;;  %v643_v30 = vmul.f32 1.442695, %v456_v5 }
 0x156   :  { %v2418_v31 = vpop.eup %1366  ;;  %1392 = vpow2.f32 %v623_v10  ;;  %825 = vadd.xlane.f32.xlu0 %v824_v53  ;;  %822 = vadd.xlane.f32.xlu1 %v821_v52  ;;  %v827_v53 = vadd.f32 %v2414_v7, %v2410_v55 }
 0x157   :  { %3861 = vst [vmem:[#allocation62_spill] sm:$0xff] %v2418_v31  ;;  %v2426_v58 = vpop.eup %1368  ;;  %1394 = vpow2.f32 %v625_v61  ;;  %v457_v61 = vsub.f32 %v1546_v11, %v2190_v20  ;;  %v460_v11 = vsub.f32 %v1549_v34, %v2190_v20  ;;  %v1551_v34 = vld [vmem:[%s3589_s0 + $0x218] sm:$0xff] }
 0x158   :  { %3863 = vst [vmem:[#allocation63_spill] sm:$0xff] %v2426_v58  ;;  %v2432_v41 = vpop.eup %1370  ;;  %1396 = vpow2.f32 %v627_v48  ;;  %v1548_v48 = vld [vmem:[%s3589_s0 + $0x200] sm:$0xff]  ;;  %v830_v25 = vadd.f32 %v2426_v58, %v2418_v31  ;;  %v462_v5 = vsub.f32 %v1551_v34, %v2190_v20  ;;  %v647_v31 = vmul.f32 1.442695, %v458_v57  ;;  %v1553_v34 = vld [vmem:[%s3589_s0 + $0x228] sm:$0xff] }
 0x159   :  { %3864 = vst [vmem:[#allocation64_spill] sm:$0xff] %v2432_v41  ;;  %v2438_v10 = vpop.eup %1372  ;;  %1398 = vpow2.f32 %v629_v36  ;;  %v459_v42 = vsub.f32 %v1548_v48, %v2190_v20  ;;  %v641_v36 = vmul.f32 1.442695, %v455_v46  ;;  %v1550_v46 = vld [vmem:[%s3589_s0 + $0x210] sm:$0xff]  ;;  %v645_v54 = vmul.f32 1.442695, %v457_v61 }
 0x15a   :  { %3865 = vst [vmem:[#allocation8_spill] sm:$0xff] %v2438_v10  ;;  %v2444_v60 = vpop.eup %1374  ;;  %1400 = vpow2.f32 %v631_v33  ;;  %831 = vadd.xlane.f32.xlu0 %v830_v25  ;;  %828 = vadd.xlane.f32.xlu1 %v827_v53  ;;  %v833_v53 = vadd.f32 %v2438_v10, %v2432_v41  ;;  %v651_v57 = vmul.f32 1.442695, %v460_v11  ;;  %v655_v41 = vmul.f32 1.442695, %v462_v5 }
 0x15b   :  { %3866 = vst [vmem:[#allocation9_spill] sm:$0xff] %v2444_v60  ;;  %v2454_v45 = vpop.eup %1376  ;;  %1402 = vpow2.f32 %v633_v1  ;;  %v461_v1 = vsub.f32 %v1550_v46, %v2190_v20 }
 0x15c   :  { %3867 = vst [vmem:[#allocation4_spill] sm:$0xff] %v2454_v45  ;;  %v2460_v52 = vpop.eup %1378  ;;  %1404 = vpow2.f32 %v635_v6  ;;  %v1552_v6 = vld [vmem:[%s3589_s0 + $0x220] sm:$0xff]  ;;  %v836_v25 = vadd.f32 %v2454_v45, %v2444_v60 }
 0x15d   :  { %3868 = vst [vmem:[#allocation5_spill] sm:$0xff] %v2460_v52  ;;  %v2466_v33 = vpop.eup %1380  ;;  %1406 = vpow2.f32 %v637_v27  ;;  %v463_v58 = vsub.f32 %v1552_v6, %v2190_v20  ;;  %v649_v27 = vmul.f32 1.442695, %v459_v42  ;;  %v464_v6 = vsub.f32 %v1553_v34, %v2190_v20  ;;  %v1554_v42 = vld [vmem:[%s3589_s0 + $0x230] sm:$0xff]  ;;  %v1555_v34 = vld [vmem:[%s3589_s0 + $0x238] sm:$0xff] }
 0x15e   :  { %3869 = vst [vmem:[#allocation2_spill] sm:$0xff] %v2466_v33  ;;  %v2472_v48 = vpop.eup %1382  ;;  %1408 = vpow2.f32 %v639_v29  ;;  %v653_v45 = vmul.f32 1.442695, %v461_v1  ;;  %837 = vadd.xlane.f32.xlu0 %v836_v25  ;;  %834 = vadd.xlane.f32.xlu1 %v833_v53  ;;  %v466_v11 = vsub.f32 %v1555_v34, %v2190_v20  ;;  %v839_v53 = vadd.f32 %v2466_v33, %v2460_v52  ;;  %v1557_v34 = vld [vmem:[%s3589_s0 + $0x248] sm:$0xff] }
 0x15f   :  { %3870 = vst [vmem:[#allocation3_spill] sm:$0xff] %v2472_v48  ;;  %v2482_v61 = vpop.eup %1384  ;;  %1410 = vpow2.f32 %v641_v36  ;;  %v465_v36 = vsub.f32 %v1554_v42, %v2190_v20  ;;  %v659_v5 = vmul.f32 1.442695, %v464_v6 }
 0x160   :  { %3871 = vst [vmem:[#allocation16_spill] sm:$0xff] %v2482_v61  ;;  %v2488_v46 = vpop.eup %1386  ;;  %1412 = vpow2.f32 %v643_v30  ;;  %v1556_v30 = vld [vmem:[%s3589_s0 + $0x240] sm:$0xff]  ;;  %v842_v25 = vadd.f32 %v2482_v61, %v2472_v48  ;;  %v663_v52 = vmul.f32 1.442695, %v466_v11 }
 0x161   :  { %3872 = vst [vmem:[#allocation17_spill] sm:$0xff] %v2488_v46  ;;  %v2494_v29 = vpop.eup %1388  ;;  %1414 = vpow2.f32 %v645_v54  ;;  %v467_v10 = vsub.f32 %v1556_v30, %v2190_v20  ;;  %v657_v54 = vmul.f32 1.442695, %v463_v58  ;;  %v468_v30 = vsub.f32 %v1557_v34, %v2190_v20  ;;  %v1558_v58 = vld [vmem:[%s3589_s0 + $0x250] sm:$0xff]  ;;  %v1559_v34 = vld [vmem:[%s3589_s0 + $0x258] sm:$0xff] }
 0x162   :  { %3873 = vst [vmem:[#allocation6_spill] sm:$0xff] %v2494_v29  ;;  %v2500_v60 = vpop.eup %1390  ;;  %1416 = vpow2.f32 %v647_v31  ;;  %v661_v61 = vmul.f32 1.442695, %v465_v36  ;;  %843 = vadd.xlane.f32.xlu0 %v842_v25  ;;  %840 = vadd.xlane.f32.xlu1 %v839_v53  ;;  %v470_v6 = vsub.f32 %v1559_v34, %v2190_v20  ;;  %v845_v53 = vadd.f32 %v2494_v29, %v2488_v46  ;;  %v1561_v34 = vld [vmem:[%s3589_s0 + $0x268] sm:$0xff] }
 0x163   :  { %3874 = vst [vmem:[#allocation7_spill] sm:$0xff] %v2500_v60  ;;  %v2510_v1 = vpop.eup %1392  ;;  %1418 = vpow2.f32 %v649_v27  ;;  %v469_v27 = vsub.f32 %v1558_v58, %v2190_v20  ;;  %v667_v11 = vmul.f32 1.442695, %v468_v30 }
 0x164   :  { %3875 = vst [vmem:[#allocation12_spill] sm:$0xff] %v2510_v1  ;;  %v2516_v42 = vpop.eup %1394  ;;  %1420 = vpow2.f32 %v651_v57  ;;  %v1560_v57 = vld [vmem:[%s3589_s0 + $0x260] sm:$0xff]  ;;  %v848_v25 = vadd.f32 %v2510_v1, %v2500_v60  ;;  %v671_v46 = vmul.f32 1.442695, %v470_v6 }
 0x165   :  { %3876 = vst [vmem:[#allocation13_spill] sm:$0xff] %v2516_v42  ;;  %v2522_v31 = vpop.eup %1396  ;;  %1422 = vpow2.f32 %v653_v45  ;;  %v471_v33 = vsub.f32 %v1560_v57, %v2190_v20  ;;  %v665_v45 = vmul.f32 1.442695, %v467_v10  ;;  %v472_v57 = vsub.f32 %v1561_v34, %v2190_v20  ;;  %v1562_v10 = vld [vmem:[%s3589_s0 + $0x270] sm:$0xff]  ;;  %v1563_v34 = vld [vmem:[%s3589_s0 + $0x278] sm:$0xff] }
 0x166   :  { %3877 = vst [vmem:[#allocation10_spill] sm:$0xff] %v2522_v31  ;;  %v2528_v48 = vpop.eup %1398  ;;  %1424 = vpow2.f32 %v655_v41  ;;  %v669_v1 = vmul.f32 1.442695, %v469_v27  ;;  %849 = vadd.xlane.f32.xlu0 %v848_v25  ;;  %846 = vadd.xlane.f32.xlu1 %v845_v53  ;;  %v474_v30 = vsub.f32 %v1563_v34, %v2190_v20  ;;  %v851_v53 = vadd.f32 %v2522_v31, %v2516_v42  ;;  %v1565_v34 = vld [vmem:[%s3589_s0 + $0x288] sm:$0xff] }
 0x167   :  { %3878 = vst [vmem:[#allocation11_spill] sm:$0xff] %v2528_v48  ;;  %v2538_v36 = vpop.eup %1400  ;;  %1426 = vpow2.f32 %v657_v54  ;;  %v473_v54 = vsub.f32 %v1562_v10, %v2190_v20  ;;  %v675_v6 = vmul.f32 1.442695, %v472_v57 }
 0x168   :  { %3879 = vst [vmem:[#allocation14_spill] sm:$0xff] %v2538_v36  ;;  %v2544_v58 = vpop.eup %1402  ;;  %1428 = vpow2.f32 %v659_v5  ;;  %v1564_v5 = vld [vmem:[%s3589_s0 + $0x280] sm:$0xff]  ;;  %v854_v25 = vadd.f32 %v2538_v36, %v2528_v48  ;;  %v679_v42 = vmul.f32 1.442695, %v474_v30 }
 0x169   :  { %3880 = vst [vmem:[#allocation15_spill] sm:$0xff] %v2544_v58  ;;  %v2550_v41 = vpop.eup %1404  ;;  %1430 = vpow2.f32 %v661_v61  ;;  %v475_v29 = vsub.f32 %v1564_v5, %v2190_v20  ;;  %v673_v61 = vmul.f32 1.442695, %v471_v33  ;;  %v476_v5 = vsub.f32 %v1565_v34, %v2190_v20  ;;  %v1566_v33 = vld [vmem:[%s3589_s0 + $0x290] sm:$0xff]  ;;  %v1567_v34 = vld [vmem:[%s3589_s0 + $0x298] sm:$0xff] }
 0x16a   :  { %3881 = vst [vmem:[#allocation20_spill] sm:$0xff] %v2550_v41  ;;  %v2556_v60 = vpop.eup %1406  ;;  %1432 = vpow2.f32 %v663_v52  ;;  %v677_v36 = vmul.f32 1.442695, %v473_v54  ;;  %855 = vadd.xlane.f32.xlu0 %v854_v25  ;;  %852 = vadd.xlane.f32.xlu1 %v851_v53  ;;  %v478_v57 = vsub.f32 %v1567_v34, %v2190_v20  ;;  %v857_v53 = vadd.f32 %v2550_v41, %v2544_v58  ;;  %v1569_v34 = vld [vmem:[%s3589_s0 + $0x2a8] sm:$0xff] }
 0x16b   :  { %3882 = vst [vmem:[#allocation21_spill] sm:$0xff] %v2556_v60  ;;  %v2566_v27 = vpop.eup %1408  ;;  %1434 = vpow2.f32 %v665_v45  ;;  %v477_v45 = vsub.f32 %v1566_v33, %v2190_v20  ;;  %v683_v30 = vmul.f32 1.442695, %v476_v5 }
 0x16c   :  { %3883 = vst [vmem:[#allocation18_spill] sm:$0xff] %v2566_v27  ;;  %v2572_v10 = vpop.eup %1410  ;;  %1436 = vpow2.f32 %v667_v11  ;;  %v1568_v11 = vld [vmem:[%s3589_s0 + $0x2a0] sm:$0xff]  ;;  %v860_v25 = vadd.f32 %v2566_v27, %v2556_v60  ;;  %v687_v58 = vmul.f32 1.442695, %v478_v57 }
 0x16d   :  { %3884 = vst [vmem:[#allocation19_spill] sm:$0xff] %v2572_v10  ;;  %v2578_v52 = vpop.eup %1412  ;;  %1438 = vpow2.f32 %v669_v1  ;;  %v479_v31 = vsub.f32 %v1568_v11, %v2190_v20  ;;  %v681_v1 = vmul.f32 1.442695, %v475_v29  ;;  %v480_v11 = vsub.f32 %v1569_v34, %v2190_v20  ;;  %v1570_v29 = vld [vmem:[%s3589_s0 + $0x2b0] sm:$0xff]  ;;  %v1571_v34 = vld [vmem:[%s3589_s0 + $0x2b8] sm:$0xff] }
 0x16e   :  { %3885 = vst [vmem:[#allocation24_spill] sm:$0xff] %v2578_v52  ;;  %v2584_v48 = vpop.eup %1414  ;;  %1440 = vpow2.f32 %v671_v46  ;;  %v685_v27 = vmul.f32 1.442695, %v477_v45  ;;  %861 = vadd.xlane.f32.xlu0 %v860_v25  ;;  %858 = vadd.xlane.f32.xlu1 %v857_v53  ;;  %v482_v5 = vsub.f32 %v1571_v34, %v2190_v20  ;;  %v863_v53 = vadd.f32 %v2578_v52, %v2572_v10  ;;  %v1573_v34 = vld [vmem:[%s3589_s0 + $0x2c8] sm:$0xff] }
 0x16f   :  { %3886 = vst [vmem:[#allocation25_spill] sm:$0xff] %v2584_v48  ;;  %v2594_v54 = vpop.eup %1416  ;;  %1442 = vpow2.f32 %v673_v61  ;;  %v481_v61 = vsub.f32 %v1570_v29, %v2190_v20  ;;  %v691_v57 = vmul.f32 1.442695, %v480_v11 }
 0x170   :  { %3887 = vst [vmem:[#allocation22_spill] sm:$0xff] %v2594_v54  ;;  %v2600_v33 = vpop.eup %1418  ;;  %1444 = vpow2.f32 %v675_v6  ;;  %v1572_v6 = vld [vmem:[%s3589_s0 + $0x2c0] sm:$0xff]  ;;  %v866_v25 = vadd.f32 %v2594_v54, %v2584_v48  ;;  %v695_v10 = vmul.f32 1.442695, %v482_v5 }
 0x171   :  { %3888 = vst [vmem:[#allocation23_spill] sm:$0xff] %v2600_v33  ;;  %v2606_v46 = vpop.eup %1420  ;;  %1446 = vpow2.f32 %v677_v36  ;;  %v483_v41 = vsub.f32 %v1572_v6, %v2190_v20  ;;  %v689_v36 = vmul.f32 1.442695, %v479_v31  ;;  %v484_v6 = vsub.f32 %v1573_v34, %v2190_v20  ;;  %v1574_v31 = vld [vmem:[%s3589_s0 + $0x2d0] sm:$0xff]  ;;  %v1575_v34 = vld [vmem:[%s3589_s0 + $0x2d8] sm:$0xff] }
 0x172   :  { %3889 = vst [vmem:[#allocation28_spill] sm:$0xff] %v2606_v46  ;;  %v2612_v60 = vpop.eup %1422  ;;  %1448 = vpow2.f32 %v679_v42  ;;  %v693_v54 = vmul.f32 1.442695, %v481_v61  ;;  %867 = vadd.xlane.f32.xlu0 %v866_v25  ;;  %864 = vadd.xlane.f32.xlu1 %v863_v53  ;;  %v486_v11 = vsub.f32 %v1575_v34, %v2190_v20  ;;  %v869_v53 = vadd.f32 %v2606_v46, %v2600_v33  ;;  %v1577_v34 = vld [vmem:[%s3589_s0 + $0x2e8] sm:$0xff] }
 0x173   :  { %3890 = vst [vmem:[#allocation29_spill] sm:$0xff] %v2612_v60  ;;  %v2622_v45 = vpop.eup %1424  ;;  %1450 = vpow2.f32 %v681_v1  ;;  %v485_v1 = vsub.f32 %v1574_v31, %v2190_v20  ;;  %v699_v5 = vmul.f32 1.442695, %v484_v6 }
 0x174   :  { %3891 = vst [vmem:[#allocation26_spill] sm:$0xff] %v2622_v45  ;;  %v2628_v29 = vpop.eup %1426  ;;  %1452 = vpow2.f32 %v683_v30  ;;  %v1576_v30 = vld [vmem:[%s3589_s0 + $0x2e0] sm:$0xff]  ;;  %v872_v25 = vadd.f32 %v2622_v45, %v2612_v60  ;;  %v703_v33 = vmul.f32 1.442695, %v486_v11 }
 0x175   :  { %3892 = vst [vmem:[#allocation27_spill] sm:$0xff] %v2628_v29  ;;  %v2634_v42 = vpop.eup %1428  ;;  %1454 = vpow2.f32 %v685_v27  ;;  %v487_v52 = vsub.f32 %v1576_v30, %v2190_v20  ;;  %v697_v27 = vmul.f32 1.442695, %v483_v41  ;;  %v488_v30 = vsub.f32 %v1577_v34, %v2190_v20  ;;  %v1578_v41 = vld [vmem:[%s3589_s0 + $0x2f0] sm:$0xff]  ;;  %v1579_v34 = vld [vmem:[%s3589_s0 + $0x2f8] sm:$0xff] }
 0x176   :  { %3893 = vst [vmem:[#allocation32_spill] sm:$0xff] %v2634_v42  ;;  %v2640_v48 = vpop.eup %1430  ;;  %1456 = vpow2.f32 %v687_v58  ;;  %v701_v45 = vmul.f32 1.442695, %v485_v1  ;;  %873 = vadd.xlane.f32.xlu0 %v872_v25  ;;  %870 = vadd.xlane.f32.xlu1 %v869_v53  ;;  %v490_v6 = vsub.f32 %v1579_v34, %v2190_v20  ;;  %v875_v53 = vadd.f32 %v2634_v42, %v2628_v29  ;;  %v1581_v34 = vld [vmem:[%s3589_s0 + $0x308] sm:$0xff] }
 0x177   :  { %3894 = vst [vmem:[#allocation33_spill] sm:$0xff] %v2640_v48  ;;  %v2650_v61 = vpop.eup %1432  ;;  %1458 = vpow2.f32 %v689_v36  ;;  %v489_v36 = vsub.f32 %v1578_v41, %v2190_v20  ;;  %v707_v11 = vmul.f32 1.442695, %v488_v30 }
 0x178   :  { %3895 = vst [vmem:[#allocation30_spill] sm:$0xff] %v2650_v61  ;;  %v2656_v31 = vpop.eup %1434  ;;  %1460 = vpow2.f32 %v691_v57  ;;  %v1580_v57 = vld [vmem:[%s3589_s0 + $0x300] sm:$0xff]  ;;  %v878_v25 = vadd.f32 %v2650_v61, %v2640_v48  ;;  %v711_v29 = vmul.f32 1.442695, %v490_v6 }
 0x179   :  { %3896 = vst [vmem:[#allocation31_spill] sm:$0xff] %v2656_v31  ;;  %v2662_v58 = vpop.eup %1436  ;;  %1462 = vpow2.f32 %v693_v54  ;;  %v491_v46 = vsub.f32 %v1580_v57, %v2190_v20  ;;  %v705_v54 = vmul.f32 1.442695, %v487_v52  ;;  %v492_v57 = vsub.f32 %v1581_v34, %v2190_v20  ;;  %v1582_v52 = vld [vmem:[%s3589_s0 + $0x310] sm:$0xff]  ;;  %v1583_v34 = vld [vmem:[%s3589_s0 + $0x318] sm:$0xff] }
 0x17a   :  { %3897 = vst [vmem:[#allocation36_spill] sm:$0xff] %v2662_v58  ;;  %v2668_v60 = vpop.eup %1438  ;;  %1464 = vpow2.f32 %v695_v10  ;;  %v709_v61 = vmul.f32 1.442695, %v489_v36  ;;  %879 = vadd.xlane.f32.xlu0 %v878_v25  ;;  %876 = vadd.xlane.f32.xlu1 %v875_v53  ;;  %v494_v30 = vsub.f32 %v1583_v34, %v2190_v20  ;;  %v881_v53 = vadd.f32 %v2662_v58, %v2656_v31  ;;  %v1585_v34 = vld [vmem:[%s3589_s0 + $0x328] sm:$0xff] }
 0x17b   :  { %3898 = vst [vmem:[#allocation37_spill] sm:$0xff] %v2668_v60  ;;  %v2678_v1 = vpop.eup %1440  ;;  %1466 = vpow2.f32 %v697_v27  ;;  %v493_v27 = vsub.f32 %v1582_v52, %v2190_v20  ;;  %v715_v6 = vmul.f32 1.442695, %v492_v57 }
 0x17c   :  { %3899 = vst [vmem:[#allocation34_spill] sm:$0xff] %v2678_v1  ;;  %v2684_v41 = vpop.eup %1442  ;;  %1468 = vpow2.f32 %v699_v5  ;;  %v1584_v5 = vld [vmem:[%s3589_s0 + $0x320] sm:$0xff]  ;;  %v884_v25 = vadd.f32 %v2678_v1, %v2668_v60  ;;  %v719_v31 = vmul.f32 1.442695, %v494_v30 }
 0x17d   :  { %3900 = vst [vmem:[#allocation35_spill] sm:$0xff] %v2684_v41  ;;  %v2690_v10 = vpop.eup %1444  ;;  %1470 = vpow2.f32 %v701_v45  ;;  %v495_v42 = vsub.f32 %v1584_v5, %v2190_v20  ;;  %v713_v45 = vmul.f32 1.442695, %v491_v46  ;;  %v496_v5 = vsub.f32 %v1585_v34, %v2190_v20  ;;  %v1586_v46 = vld [vmem:[%s3589_s0 + $0x330] sm:$0xff]  ;;  %v1587_v34 = vld [vmem:[%s3589_s0 + $0x338] sm:$0xff] }
 0x17e   :  { %3901 = vst [vmem:[#allocation40_spill] sm:$0xff] %v2690_v10  ;;  %v2696_v48 = vpop.eup %1446  ;;  %1472 = vpow2.f32 %v703_v33  ;;  %v717_v1 = vmul.f32 1.442695, %v493_v27  ;;  %885 = vadd.xlane.f32.xlu0 %v884_v25  ;;  %882 = vadd.xlane.f32.xlu1 %v881_v53  ;;  %v498_v57 = vsub.f32 %v1587_v34, %v2190_v20  ;;  %v887_v53 = vadd.f32 %v2690_v10, %v2684_v41  ;;  %v1589_v34 = vld [vmem:[%s3589_s0 + $0x348] sm:$0xff] }
 0x17f   :  { %3902 = vst [vmem:[#allocation41_spill] sm:$0xff] %v2696_v48  ;;  %v2706_v36 = vpop.eup %1448  ;;  %1474 = vpow2.f32 %v705_v54  ;;  %v497_v54 = vsub.f32 %v1586_v46, %v2190_v20  ;;  %v723_v30 = vmul.f32 1.442695, %v496_v5 }
 0x180   :  { %3903 = vst [vmem:[#allocation38_spill] sm:$0xff] %v2706_v36  ;;  %v2712_v52 = vpop.eup %1450  ;;  %1476 = vpow2.f32 %v707_v11  ;;  %v1588_v11 = vld [vmem:[%s3589_s0 + $0x340] sm:$0xff]  ;;  %v890_v25 = vadd.f32 %v2706_v36, %v2696_v48  ;;  %v727_v41 = vmul.f32 1.442695, %v498_v57 }
 0x181   :  { %3904 = vst [vmem:[#allocation39_spill] sm:$0xff] %v2712_v52  ;;  %v2718_v33 = vpop.eup %1452  ;;  %1478 = vpow2.f32 %v709_v61  ;;  %v499_v58 = vsub.f32 %v1588_v11, %v2190_v20  ;;  %v721_v61 = vmul.f32 1.442695, %v495_v42  ;;  %v500_v11 = vsub.f32 %v1589_v34, %v2190_v20  ;;  %v1590_v42 = vld [vmem:[%s3589_s0 + $0x350] sm:$0xff]  ;;  %v1591_v34 = vld [vmem:[%s3589_s0 + $0x358] sm:$0xff] }
 0x182   :  { %3905 = vst [vmem:[#allocation44_spill] sm:$0xff] %v2718_v33  ;;  %v2724_v60 = vpop.eup %1454  ;;  %1480 = vpow2.f32 %v711_v29  ;;  %v725_v36 = vmul.f32 1.442695, %v497_v54  ;;  %891 = vadd.xlane.f32.xlu0 %v890_v25  ;;  %888 = vadd.xlane.f32.xlu1 %v887_v53  ;;  %v502_v5 = vsub.f32 %v1591_v34, %v2190_v20  ;;  %v893_v53 = vadd.f32 %v2718_v33, %v2712_v52  ;;  %v1593_v34 = vld [vmem:[%s3589_s0 + $0x368] sm:$0xff] }
 0x183   :  { %3906 = vst [vmem:[#allocation45_spill] sm:$0xff] %v2724_v60  ;;  %v2734_v27 = vpop.eup %1456  ;;  %1482 = vpow2.f32 %v713_v45  ;;  %v501_v45 = vsub.f32 %v1590_v42, %v2190_v20  ;;  %v731_v57 = vmul.f32 1.442695, %v500_v11 }
 0x184   :  { %3907 = vst [vmem:[#allocation42_spill] sm:$0xff] %v2734_v27  ;;  %v2740_v46 = vpop.eup %1458  ;;  %1484 = vpow2.f32 %v715_v6  ;;  %v1592_v6 = vld [vmem:[%s3589_s0 + $0x360] sm:$0xff]  ;;  %v896_v25 = vadd.f32 %v2734_v27, %v2724_v60  ;;  %v735_v52 = vmul.f32 1.442695, %v502_v5 }
 0x185   :  { %3908 = vst [vmem:[#allocation43_spill] sm:$0xff] %v2740_v46  ;;  %v2746_v29 = vpop.eup %1460  ;;  %1486 = vpow2.f32 %v717_v1  ;;  %v503_v10 = vsub.f32 %v1592_v6, %v2190_v20  ;;  %v729_v1 = vmul.f32 1.442695, %v499_v58  ;;  %v504_v6 = vsub.f32 %v1593_v34, %v2190_v20  ;;  %v1594_v58 = vld [vmem:[%s3589_s0 + $0x370] sm:$0xff]  ;;  %v1595_v34 = vld [vmem:[%s3589_s0 + $0x378] sm:$0xff] }
 0x186   :  { %3909 = vst [vmem:[#allocation48_spill] sm:$0xff] %v2746_v29  ;;  %v2752_v48 = vpop.eup %1462  ;;  %1488 = vpow2.f32 %v719_v31  ;;  %v733_v27 = vmul.f32 1.442695, %v501_v45  ;;  %897 = vadd.xlane.f32.xlu0 %v896_v25  ;;  %894 = vadd.xlane.f32.xlu1 %v893_v53  ;;  %v506_v11 = vsub.f32 %v1595_v34, %v2190_v20  ;;  %v899_v53 = vadd.f32 %v2746_v29, %v2740_v46  ;;  %v1597_v34 = vld [vmem:[%s3589_s0 + $0x388] sm:$0xff] }
 0x187   :  { %3910 = vst [vmem:[#allocation49_spill] sm:$0xff] %v2752_v48  ;;  %v2762_v54 = vpop.eup %1464  ;;  %1490 = vpow2.f32 %v721_v61  ;;  %v505_v61 = vsub.f32 %v1594_v58, %v2190_v20  ;;  %v739_v5 = vmul.f32 1.442695, %v504_v6 }
 0x188   :  { %3911 = vst [vmem:[#allocation46_spill] sm:$0xff] %v2762_v54  ;;  %v2768_v42 = vpop.eup %1466  ;;  %1492 = vpow2.f32 %v723_v30  ;;  %v1596_v30 = vld [vmem:[%s3589_s0 + $0x380] sm:$0xff]  ;;  %v902_v25 = vadd.f32 %v2762_v54, %v2752_v48  ;;  %v743_v46 = vmul.f32 1.442695, %v506_v11 }
 0x189   :  { %3912 = vst [vmem:[#allocation47_spill] sm:$0xff] %v2768_v42  ;;  %v2774_v31 = vpop.eup %1468  ;;  %1494 = vpow2.f32 %v725_v36  ;;  %v507_v33 = vsub.f32 %v1596_v30, %v2190_v20  ;;  %v737_v36 = vmul.f32 1.442695, %v503_v10  ;;  %v508_v30 = vsub.f32 %v1597_v34, %v2190_v20  ;;  %v1598_v10 = vld [vmem:[%s3589_s0 + $0x390] sm:$0xff]  ;;  %v1599_v34 = vld [vmem:[%s3589_s0 + $0x398] sm:$0xff] }
 0x18a   :  { %3913 = vst [vmem:[#allocation52_spill] sm:$0xff] %v2774_v31  ;;  %v2780_v60 = vpop.eup %1470  ;;  %1496 = vpow2.f32 %v727_v41  ;;  %v741_v54 = vmul.f32 1.442695, %v505_v61  ;;  %903 = vadd.xlane.f32.xlu0 %v902_v25  ;;  %900 = vadd.xlane.f32.xlu1 %v899_v53  ;;  %v510_v6 = vsub.f32 %v1599_v34, %v2190_v20  ;;  %v905_v53 = vadd.f32 %v2774_v31, %v2768_v42  ;;  %v1601_v34 = vld [vmem:[%s3589_s0 + $0x3a8] sm:$0xff] }
 0x18b   :  { %3914 = vst [vmem:[#allocation53_spill] sm:$0xff] %v2780_v60  ;;  %v2790_v45 = vpop.eup %1472  ;;  %1498 = vpow2.f32 %v729_v1  ;;  %v509_v1 = vsub.f32 %v1598_v10, %v2190_v20  ;;  %v747_v11 = vmul.f32 1.442695, %v508_v30 }
 0x18c   :  { %3915 = vst [vmem:[#allocation50_spill] sm:$0xff] %v2790_v45  ;;  %v2796_v58 = vpop.eup %1474  ;;  %1500 = vpow2.f32 %v731_v57  ;;  %v1600_v57 = vld [vmem:[%s3589_s0 + $0x3a0] sm:$0xff]  ;;  %v908_v25 = vadd.f32 %v2790_v45, %v2780_v60  ;;  %v751_v42 = vmul.f32 1.442695, %v510_v6 }
 0x18d   :  { %3916 = vst [vmem:[#allocation51_spill] sm:$0xff] %v2796_v58  ;;  %v2802_v41 = vpop.eup %1476  ;;  %1502 = vpow2.f32 %v733_v27  ;;  %v511_v29 = vsub.f32 %v1600_v57, %v2190_v20  ;;  %v745_v27 = vmul.f32 1.442695, %v507_v33  ;;  %v512_v57 = vsub.f32 %v1601_v34, %v2190_v20  ;;  %v1602_v33 = vld [vmem:[%s3589_s0 + $0x3b0] sm:$0xff]  ;;  %v1603_v34 = vld [vmem:[%s3589_s0 + $0x3b8] sm:$0xff] }
 0x18e   :  { %3917 = vst [vmem:[#allocation56_spill] sm:$0xff] %v2802_v41  ;;  %v2808_v48 = vpop.eup %1478  ;;  %1504 = vpow2.f32 %v735_v52  ;;  %v749_v45 = vmul.f32 1.442695, %v509_v1  ;;  %909 = vadd.xlane.f32.xlu0 %v908_v25  ;;  %906 = vadd.xlane.f32.xlu1 %v905_v53  ;;  %v514_v30 = vsub.f32 %v1603_v34, %v2190_v20  ;;  %v911_v53 = vadd.f32 %v2802_v41, %v2796_v58  ;;  %v1605_v34 = vld [vmem:[%s3589_s0 + $0x3c8] sm:$0xff] }
 0x18f   :  { %3918 = vst [vmem:[#allocation57_spill] sm:$0xff] %v2808_v48  ;;  %v2818_v61 = vpop.eup %1480  ;;  %1506 = vpow2.f32 %v737_v36  ;;  %v513_v36 = vsub.f32 %v1602_v33, %v2190_v20  ;;  %v755_v6 = vmul.f32 1.442695, %v512_v57 }
 0x190   :  { %3919 = vst [vmem:[#allocation54_spill] sm:$0xff] %v2818_v61  ;;  %v2824_v10 = vpop.eup %1482  ;;  %1508 = vpow2.f32 %v739_v5  ;;  %v1604_v5 = vld [vmem:[%s3589_s0 + $0x3c0] sm:$0xff]  ;;  %v914_v25 = vadd.f32 %v2818_v61, %v2808_v48  ;;  %v759_v58 = vmul.f32 1.442695, %v514_v30 }
 0x191   :  { %3920 = vst [vmem:[#allocation55_spill] sm:$0xff] %v2824_v10  ;;  %v2830_v52 = vpop.eup %1484  ;;  %1510 = vpow2.f32 %v741_v54  ;;  %v515_v31 = vsub.f32 %v1604_v5, %v2190_v20  ;;  %v753_v54 = vmul.f32 1.442695, %v511_v29  ;;  %v516_v5 = vsub.f32 %v1605_v34, %v2190_v20  ;;  %v1606_v29 = vld [vmem:[%s3589_s0 + $0x3d0] sm:$0xff]  ;;  %v1607_v34 = vld [vmem:[%s3589_s0 + $0x3d8] sm:$0xff] }
 0x192   :  { %3921 = vst [vmem:[#allocation59_spill] sm:$0xff] %v2830_v52  ;;  %v2836_v60 = vpop.eup %1486  ;;  %1512 = vpow2.f32 %v743_v46  ;;  %v757_v61 = vmul.f32 1.442695, %v513_v36  ;;  %915 = vadd.xlane.f32.xlu0 %v914_v25  ;;  %912 = vadd.xlane.f32.xlu1 %v911_v53  ;;  %v518_v57 = vsub.f32 %v1607_v34, %v2190_v20  ;;  %v917_v53 = vadd.f32 %v2830_v52, %v2824_v10  ;;  %v1609_v34 = vld [vmem:[%s3589_s0 + $0x3e8] sm:$0x1f] }
 0x193   :  { %3922 = vst [vmem:[#allocation60_spill] sm:$0xff] %v2836_v60  ;;  %v2846_v1 = vpop.eup %1488  ;;  %1514 = vpow2.f32 %v745_v27  ;;  %v517_v27 = vsub.f32 %v1606_v29, %v2190_v20  ;;  %v763_v30 = vmul.f32 1.442695, %v516_v5 }
 0x194   :  { %3923 = vst [vmem:[#allocation58_spill] sm:$0xff] %v2846_v1  ;;  %v2852_v33 = vpop.eup %1490  ;;  %1516 = vpow2.f32 %v747_v11  ;;  %v1608_v11 = vld [vmem:[%s3589_s0 + $0x3e0] sm:$0x1f]  ;;  %v920_v25 = vadd.f32 %v2846_v1, %v2836_v60  ;;  %v767_v1 = vmul.f32 1.442695, %v518_v57 }
 0x195   :  { %v2858_v46 = vpop.eup %1492  ;;  %1518 = vpow2.f32 %v749_v45  ;;  %v519_v41 = vsub.f32 %v1608_v11, %v2190_v20  ;;  %v761_v45 = vmul.f32 1.442695, %v515_v31  ;;  %v520_v11 = vsub.f32 %v1609_v34, %v2190_v20 }
 0x196   :  { %v2864_v48 = vpop.eup %1494  ;;  %1520 = vpow2.f32 %v751_v42  ;;  %v765_v31 = vmul.f32 1.442695, %v517_v27  ;;  %921 = vadd.xlane.f32.xlu0 %v920_v25  ;;  %918 = vadd.xlane.f32.xlu1 %v917_v53  ;;  %v923_v20 = vadd.f32 %v2858_v46, %v2852_v33 }
 0x197   :  { %v2874_v36 = vpop.eup %1496  ;;  %1522 = vpow2.f32 %v753_v54  ;;  %v769_v52 = vmul.f32 1.442695, %v519_v41 }
 0x198   :  { %3924 = vst [vmem:[#allocation61_spill] sm:$0xff] %v2874_v36  ;;  %v2880_v29 = vpop.eup %1498  ;;  %1524 = vpow2.f32 %v755_v6  ;;  %v926_v10 = vadd.f32 %v2874_v36, %v2864_v48  ;;  %v771_v6 = vmul.f32 1.442695, %v520_v11 }
 0x199   :  { %3925 = vst [vmem:[#allocation65_spill] sm:$0xff] %v2880_v29  ;;  %v2886_v42 = vpop.eup %1500  ;;  %1526 = vpow2.f32 %v757_v61 }
 0x19a   :  { %3926 = vst [vmem:[#allocation66_spill] sm:$0xff] %v2886_v42  ;;  %v2888_v54 = vpop.eup %1502  ;;  %1528 = vpow2.f32 %v759_v58  ;;  %927 = vadd.xlane.f32.xlu0 %v926_v10  ;;  %924 = vadd.xlane.f32.xlu1 %v923_v20  ;;  %v929_v57 = vadd.f32 %v2886_v42, %v2880_v29 }
 0x19b   :  { %3927 = vst [vmem:[#allocation67_spill] sm:$0xff] %v2888_v54  ;;  %v2890_v60 = vpop.eup %1504  ;;  %1530 = vpow2.f32 %v761_v45 }
 0x19c   :  { %3928 = vst [vmem:[#allocation68_spill] sm:$0xff] %v2890_v60  ;;  %v2896_v5 = vpop.eup %1506  ;;  %1532 = vpow2.f32 %v763_v30  ;;  %v932_v27 = vadd.f32 %v2890_v60, %v2888_v54 }
 0x19d   :  { %3929 = vst [vmem:[#allocation69_spill] sm:$0xff] %v2896_v5  ;;  %v2898_v61 = vpop.eup %1508  ;;  %1534 = vpow2.f32 %v765_v31 }
 0x19e   :  { %3930 = vst [vmem:[#allocation70_spill] sm:$0xff] %v2898_v61  ;;  %v2900_v58 = vpop.eup %1510  ;;  %1536 = vpow2.f32 %v767_v1  ;;  %933 = vadd.xlane.f32.xlu0 %v932_v27  ;;  %930 = vadd.xlane.f32.xlu1 %v929_v57  ;;  %v935_v1 = vadd.f32 %v2898_v61, %v2896_v5 }
 0x19f   :  { %3931 = vst [vmem:[#allocation71_spill] sm:$0xff] %v2900_v58  ;;  %v2902_v41 = vpop.eup %1512  ;;  %1538 = vpow2.f32 %v769_v52 }
 0x1a0   :  { %3932 = vst [vmem:[#allocation72_spill] sm:$0xff] %v2902_v41  ;;  %v2908_v45 = vpop.eup %1514  ;;  %1540 = vpow2.f32 %v771_v6  ;;  %v938_v52 = vadd.f32 %v2902_v41, %v2900_v58 }
 0x1a1   :  { %3933 = vst [vmem:[#allocation73_spill] sm:$0xff] %v2908_v45  ;;  %v2910_v25 = vpop.eup %1516 }
 0x1a2   :  { %3934 = vst [vmem:[#allocation74_spill] sm:$0xff] %v2910_v25  ;;  %v2912_v10 = vpop.eup %1518  ;;  %939 = vadd.xlane.f32.xlu0 %v938_v52  ;;  %936 = vadd.xlane.f32.xlu1 %v935_v1  ;;  %v941_v6 = vadd.f32 %v2910_v25, %v2908_v45 }
 0x1a3   :  { %3935 = vst [vmem:[#allocation75_spill] sm:$0xff] %v2912_v10  ;;  %v2914_v53 = vpop.eup %1520 }
 0x1a4   :  { %3936 = vst [vmem:[#allocation76_spill] sm:$0xff] %v2914_v53  ;;  %v2920_v34 = vpop.eup %1522  ;;  %v944_v20 = vadd.f32 %v2914_v53, %v2912_v10 }
 0x1a5   :  { %3937 = vst [vmem:[#allocation77_spill] sm:$0xff] %v2920_v34  ;;  %v2922_v11 = vpop.eup %1524 }
 0x1a6   :  { %3938 = vst [vmem:[#allocation78_spill] sm:$0xff] %v2922_v11  ;;  %v2924_v30 = vpop.eup %1526  ;;  %945 = vadd.xlane.f32.xlu0 %v944_v20  ;;  %942 = vadd.xlane.f32.xlu1 %v941_v6  ;;  %v947_v58 = vadd.f32 %v2922_v11, %v2920_v34 }
 0x1a7   :  { %3939 = vst [vmem:[#allocation79_spill] sm:$0xff] %v2924_v30  ;;  %v2926_v31 = vpop.eup %1528 }
 0x1a8   :  { %3940 = vst [vmem:[#allocation80_spill] sm:$0xff] %v2926_v31  ;;  %v2932_v27 = vpop.eup %1530  ;;  %v950_v1 = vadd.f32 %v2926_v31, %v2924_v30 }
 0x1a9   :  { %3941 = vst [vmem:[#allocation81_spill] sm:$0xff] %v2932_v27  ;;  %v2934_v57 = vpop.eup %1532 }
 0x1aa   :  { %3942 = vst [vmem:[#allocation82_spill] sm:$0xff] %v2934_v57  ;;  %v2936_v41 = vpop.eup %1534  ;;  %951 = vadd.xlane.f32.xlu0 %v950_v1  ;;  %948 = vadd.xlane.f32.xlu1 %v947_v58  ;;  %v953_v6 = vadd.f32 %v2934_v57, %v2932_v27 }
 0x1ab   :  { %3943 = vst [vmem:[#allocation83_spill] sm:$0xff] %v2936_v41  ;;  %v2938_v52 = vpop.eup %1536 }
 0x1ac   :  { %3944 = vst [vmem:[#allocation84_spill] sm:$0xff] %v2938_v52  ;;  %v2944_v53 = vpop.eup %1538  ;;  %v956_v20 = vadd.f32 %v2938_v52, %v2936_v41 }
 0x1ad   :  { %3945 = vst [vmem:[#allocation85_spill] sm:$0xff] %v2944_v53  ;;  %v2946_v10 = vpop.eup %1540  ;;  %v959_v25 = vsel %vm320_vm0, %v2944_v53, 0.0 }
 0x1ae   :  { %3946 = vst [vmem:[#allocation86_spill] sm:$0xff] %v2946_v10  ;;  %v960_v31 = vsel %vm320_vm0, %v2946_v10, 0.0  ;;  %957 = vadd.xlane.f32.xlu0 %v956_v20  ;;  %954 = vadd.xlane.f32.xlu1 %v953_v6 }
 0x1af   :  { %v961_v30 = vadd.f32 %v960_v31, %v959_v25 }
 0x1b2   :  { %962 = vadd.xlane.f32.xlu1 %v961_v30 }
 0x1bd   :  { %v778_v11 = vpop.xlane.xlu0 %777 }
 0x1bf   :  { %v775_v34 = vpop.xlane.xlu1 %774 }
 0x1c0   :  { %v964_v1 = vadd.f32 %v778_v11, %v775_v34 }
 0x1c3   :  { %v784_v58 = vpop.xlane.xlu0 %783  ;;  %v781_v45 = vpop.xlane.xlu1 %780 }
 0x1c4   :  { %v965_v61 = vadd.f32 %v964_v1, %v781_v45 }
 0x1c6   :  { %v966_v52 = vadd.f32 %v965_v61, %v784_v58 }
 0x1c7   :  { %v790_v41 = vpop.xlane.xlu0 %789  ;;  %v787_v5 = vpop.xlane.xlu1 %786 }
 0x1c8   :  { %v967_v57 = vadd.f32 %v966_v52, %v787_v5 }
 0x1ca   :  { %v968_v27 = vadd.f32 %v967_v57, %v790_v41 }
 0x1cb   :  { %v796_v60 = vpop.xlane.xlu0 %795  ;;  %v793_v53 = vpop.xlane.xlu1 %792 }
 0x1cc   :  { %v969_v54 = vadd.f32 %v968_v27, %v793_v53 }
 0x1ce   :  { %v970_v42 = vadd.f32 %v969_v54, %v796_v60 }
 0x1cf   :  { %v802_v10 = vpop.xlane.xlu0 %801  ;;  %v799_v20 = vpop.xlane.xlu1 %798 }
 0x1d0   :  { %v971_v6 = vadd.f32 %v970_v42, %v799_v20 }
 0x1d2   :  { %v972_v25 = vadd.f32 %v971_v6, %v802_v10 }
 0x1d3   :  { %v808_v30 = vpop.xlane.xlu0 %807  ;;  %v805_v31 = vpop.xlane.xlu1 %804 }
 0x1d4   :  { %v973_v29 = vadd.f32 %v972_v25, %v805_v31 }
 0x1d6   :  { %v974_v34 = vadd.f32 %v973_v29, %v808_v30 }
 0x1d7   :  { %v814_v11 = vpop.xlane.xlu0 %813  ;;  %v811_v36 = vpop.xlane.xlu1 %810 }
 0x1d8   :  { %v975_v45 = vadd.f32 %v974_v34, %v811_v36 }
 0x1da   :  { %v976_v61 = vadd.f32 %v975_v45, %v814_v11 }
 0x1db   :  { %v820_v1 = vpop.xlane.xlu0 %819  ;;  %v817_v58 = vpop.xlane.xlu1 %816 }
 0x1dc   :  { %v977_v5 = vadd.f32 %v976_v61, %v817_v58 }
 0x1de   :  { %v978_v41 = vadd.f32 %v977_v5, %v820_v1 }
 0x1df   :  { %v826_v57 = vpop.xlane.xlu0 %825  ;;  %v823_v52 = vpop.xlane.xlu1 %822 }
 0x1e0   :  { %v979_v53 = vadd.f32 %v978_v41, %v823_v52 }
 0x1e2   :  { %v980_v60 = vadd.f32 %v979_v53, %v826_v57 }
 0x1e3   :  { %v832_v54 = vpop.xlane.xlu0 %831  ;;  %v829_v27 = vpop.xlane.xlu1 %828 }
 0x1e4   :  { %v981_v42 = vadd.f32 %v980_v60, %v829_v27 }
 0x1e6   :  { %v982_v10 = vadd.f32 %v981_v42, %v832_v54 }
 0x1e7   :  { %v838_v20 = vpop.xlane.xlu0 %837  ;;  %v835_v6 = vpop.xlane.xlu1 %834 }
 0x1e8   :  { %v983_v25 = vadd.f32 %v982_v10, %v835_v6 }
 0x1ea   :  { %v984_v29 = vadd.f32 %v983_v25, %v838_v20 }
 0x1eb   :  { %v844_v30 = vpop.xlane.xlu0 %843  ;;  %v841_v31 = vpop.xlane.xlu1 %840 }
 0x1ec   :  { %v985_v36 = vadd.f32 %v984_v29, %v841_v31 }
 0x1ee   :  { %v986_v34 = vadd.f32 %v985_v36, %v844_v30 }
 0x1ef   :  { %v850_v11 = vpop.xlane.xlu0 %849  ;;  %v847_v45 = vpop.xlane.xlu1 %846 }
 0x1f0   :  { %v987_v61 = vadd.f32 %v986_v34, %v847_v45 }
 0x1f2   :  { %v988_v1 = vadd.f32 %v987_v61, %v850_v11 }
 0x1f3   :  { %v856_v58 = vpop.xlane.xlu0 %855  ;;  %v853_v5 = vpop.xlane.xlu1 %852 }
 0x1f4   :  { %v989_v41 = vadd.f32 %v988_v1, %v853_v5 }
 0x1f6   :  { %v990_v57 = vadd.f32 %v989_v41, %v856_v58 }
 0x1f7   :  { %v862_v52 = vpop.xlane.xlu0 %861  ;;  %v859_v53 = vpop.xlane.xlu1 %858 }
 0x1f8   :  { %v991_v60 = vadd.f32 %v990_v57, %v859_v53 }
 0x1fa   :  { %v992_v54 = vadd.f32 %v991_v60, %v862_v52 }
 0x1fb   :  { %v868_v27 = vpop.xlane.xlu0 %867  ;;  %v865_v42 = vpop.xlane.xlu1 %864 }
 0x1fc   :  { %v993_v10 = vadd.f32 %v992_v54, %v865_v42 }
 0x1fe   :  { %v994_v20 = vadd.f32 %v993_v10, %v868_v27 }
 0x1ff   :  { %v874_v6 = vpop.xlane.xlu0 %873  ;;  %v871_v25 = vpop.xlane.xlu1 %870 }
 0x200   :  { %v995_v29 = vadd.f32 %v994_v20, %v871_v25 }
 0x202   :  { %v996_v30 = vadd.f32 %v995_v29, %v874_v6 }
 0x203   :  { %v880_v31 = vpop.xlane.xlu0 %879  ;;  %v877_v36 = vpop.xlane.xlu1 %876 }
 0x204   :  { %v997_v34 = vadd.f32 %v996_v30, %v877_v36 }
 0x206   :  { %v998_v11 = vadd.f32 %v997_v34, %v880_v31 }
 0x207   :  { %v886_v45 = vpop.xlane.xlu0 %885  ;;  %v883_v61 = vpop.xlane.xlu1 %882 }
 0x208   :  { %v999_v1 = vadd.f32 %v998_v11, %v883_v61 }
 0x20a   :  { %v1000_v58 = vadd.f32 %v999_v1, %v886_v45 }
 0x20b   :  { %v892_v5 = vpop.xlane.xlu0 %891  ;;  %v889_v41 = vpop.xlane.xlu1 %888 }
 0x20c   :  { %v1001_v57 = vadd.f32 %v1000_v58, %v889_v41 }
 0x20e   :  { %v1002_v52 = vadd.f32 %v1001_v57, %v892_v5 }
 0x20f   :  { %v898_v53 = vpop.xlane.xlu0 %897  ;;  %v895_v60 = vpop.xlane.xlu1 %894 }
 0x210   :  { %v1003_v54 = vadd.f32 %v1002_v52, %v895_v60 }
 0x212   :  { %v1004_v27 = vadd.f32 %v1003_v54, %v898_v53 }
 0x213   :  { %v904_v42 = vpop.xlane.xlu0 %903  ;;  %v901_v10 = vpop.xlane.xlu1 %900 }
 0x214   :  { %v1005_v20 = vadd.f32 %v1004_v27, %v901_v10 }
 0x216   :  { %v1006_v6 = vadd.f32 %v1005_v20, %v904_v42 }
 0x217   :  { %v910_v25 = vpop.xlane.xlu0 %909  ;;  %v907_v29 = vpop.xlane.xlu1 %906 }
 0x218   :  { %v1007_v30 = vadd.f32 %v1006_v6, %v907_v29 }
 0x21a   :  { %v1008_v31 = vadd.f32 %v1007_v30, %v910_v25 }
 0x21b   :  { %v916_v36 = vpop.xlane.xlu0 %915  ;;  %v913_v34 = vpop.xlane.xlu1 %912 }
 0x21c   :  { %v1009_v11 = vadd.f32 %v1008_v31, %v913_v34 }
 0x21e   :  { %v1010_v45 = vadd.f32 %v1009_v11, %v916_v36 }
 0x21f   :  { %v922_v61 = vpop.xlane.xlu0 %921  ;;  %v919_v1 = vpop.xlane.xlu1 %918 }
 0x220   :  { %v1011_v58 = vadd.f32 %v1010_v45, %v919_v1 }
 0x222   :  { %v1012_v5 = vadd.f32 %v1011_v58, %v922_v61 }
 0x223   :  { %v928_v41 = vpop.xlane.xlu0 %927  ;;  %v925_v57 = vpop.xlane.xlu1 %924 }
 0x224   :  { %v1013_v52 = vadd.f32 %v1012_v5, %v925_v57 }
 0x226   :  { %v1014_v53 = vadd.f32 %v1013_v52, %v928_v41 }
 0x227   :  { %v934_v60 = vpop.xlane.xlu0 %933  ;;  %v931_v54 = vpop.xlane.xlu1 %930 }
 0x228   :  { %v1015_v27 = vadd.f32 %v1014_v53, %v931_v54 }
 0x22a   :  { %v1016_v42 = vadd.f32 %v1015_v27, %v934_v60 }
 0x22b   :  { %v940_v10 = vpop.xlane.xlu0 %939  ;;  %v937_v20 = vpop.xlane.xlu1 %936 }
 0x22c   :  { %v1017_v6 = vadd.f32 %v1016_v42, %v937_v20 }
 0x22e   :  { %v1018_v25 = vadd.f32 %v1017_v6, %v940_v10 }
 0x22f   :  { %v946_v29 = vpop.xlane.xlu0 %945  ;;  %v943_v30 = vpop.xlane.xlu1 %942 }
 0x230   :  { %v1019_v31 = vadd.f32 %v1018_v25, %v943_v30 }
 0x232   :  { %v1020_v36 = vadd.f32 %v1019_v31, %v946_v29 }
 0x233   :  { %v952_v34 = vpop.xlane.xlu0 %951  ;;  %v949_v11 = vpop.xlane.xlu1 %948 }
 0x234   :  { %v1021_v45 = vadd.f32 %v1020_v36, %v949_v11 }
 0x236   :  { %v1022_v61 = vadd.f32 %v1021_v45, %v952_v34 }
 0x237   :  { %v955_v1 = vpop.xlane.xlu1 %954  ;;  %v958_v5 = vpop.xlane.xlu0 %957 }
 0x238   :  { %v1023_v58 = vadd.f32 %v1022_v61, %v955_v1  ;;  %v3951_v61 = vld [vmem:[#allocation9_spill] sm:$0xff] }
 0x23a   :  { %v1024_v41 = vadd.f32 %v1023_v58, %v958_v5  ;;  %v3952_v58 = vld [vmem:[#allocation4_spill] sm:$0xff] }
 0x23b   :  { %v963_v57 = vpop.xlane.xlu1 %962 }
 0x23c   :  { %v1025_v52 = vsel %vm320_vm0, %v963_v57, 0.0 }
 0x23d   :  { %v1026_v53 = vadd.f32 %v1025_v52, %v1024_v41  ;;  %v3953_v41 = vld [vmem:[#allocation5_spill] sm:$0xff]  ;;  %v3954_v52 = vld [vmem:[#allocation2_spill] sm:$0xff] }
 0x23f   :  { %v1027_v60 = vrot.slane %v1026_v53, 4 }
 0x241   :  { %v1028_v54 = vadd.f32 %v1027_v60, %v1026_v53  ;;  %v3955_v60 = vld [vmem:[#allocation3_spill] sm:$0xff] }
 0x243   :  { %v1029_v27 = vrot.slane %v1028_v54, 2 }
 0x245   :  { %v1030_v42 = vadd.f32 %v1029_v27, %v1028_v54  ;;  %v3956_v27 = vld [vmem:[#allocation16_spill] sm:$0xff] }
 0x247   :  { %v1031_v10 = vrot.slane %v1030_v42, 1 }
 0x249   :  { %v1032_v20 = vadd.f32 %v1031_v10, %v1030_v42  ;;  %v3957_v10 = vld [vmem:[#allocation17_spill] sm:$0xff] }
 0x24b   :  { %1542 = vrcp.f32 %v1032_v20 }
 0x258   :  { %v2957_v6 = vpop.eup %1542 }
 0x259   :  { %v1034_v25 = vmul.f32 %v2957_v6, %v2210_v15  ;;  %v1035_v29 = vmul.f32 %v2957_v6, %v2216_v62  ;;  %v1036_v30 = vmul.f32 %v2957_v6, %v2202_v2  ;;  %v1037_v31 = vmul.f32 %v2957_v6, %v2206_v8 }
 0x25a   :  { %v1038_v36 = vmul.f32 %v2957_v6, %v2254_v9  ;;  %v1039_v34 = vmul.f32 %v2957_v6, %v2258_v16  ;;  %v1040_v11 = vmul.f32 %v2957_v6, %v2262_v63  ;;  %v1041_v15 = vmul.f32 %v2957_v6, %v2266_v59 }
 0x25b   :  { %v1042_v62 = vmul.f32 %v2957_v6, %v2270_v43  ;;  %v1043_v2 = vmul.f32 %v2957_v6, %v2274_v44  ;;  %v1044_v8 = vmul.f32 %v2957_v6, %v2278_v38  ;;  %v1045_v9 = vmul.f32 %v2957_v6, %v2284_v32  ;;  %1160 = vst [vmem:[%s3590_s1] sm:$0xff] %v1034_v25  ;;  %v3958_v25 = vld [vmem:[#allocation6_spill] sm:$0xff] }
 0x25c   :  { %1161 = vst [vmem:[%s3590_s1 + $0x8] sm:$0xff] %v1035_v29  ;;  %1162 = vst [vmem:[%s3590_s1 + $0x10] sm:$0xff] %v1036_v30  ;;  %v1046_v16 = vmul.f32 %v2957_v6, %v2290_v26  ;;  %v1047_v63 = vmul.f32 %v2957_v6, %v2294_v19  ;;  %v1048_v59 = vmul.f32 %v2957_v6, %v2298_v12  ;;  %v3959_v30 = vld [vmem:[#allocation7_spill] sm:$0xff] }
 0x25d   :  { %1163 = vst [vmem:[%s3590_s1 + $0x18] sm:$0xff] %v1037_v31  ;;  %v1049_v43 = vmul.f32 %v2957_v6, %v2304_v22  ;;  %1164 = vst [vmem:[%s3590_s1 + $0x20] sm:$0xff] %v1038_v36  ;;  %v1050_v44 = vmul.f32 %v2957_v6, %v2310_v23  ;;  %v1051_v38 = vmul.f32 %v2957_v6, %v2314_v21  ;;  %v3960_v36 = vld [vmem:[#allocation12_spill] sm:$0xff] }
 0x25e   :  { %1165 = vst [vmem:[%s3590_s1 + $0x28] sm:$0xff] %v1039_v34  ;;  %1166 = vst [vmem:[%s3590_s1 + $0x30] sm:$0xff] %v1040_v11  ;;  %v1052_v32 = vmul.f32 %v2957_v6, %v2318_v39  ;;  %v1053_v26 = vmul.f32 %v2957_v6, %v2324_v56  ;;  %v1054_v19 = vmul.f32 %v2957_v6, %v2330_v50  ;;  %v3961_v11 = vld [vmem:[#allocation13_spill] sm:$0xff] }
 0x25f   :  { %1167 = vst [vmem:[%s3590_s1 + $0x38] sm:$0xff] %v1041_v15  ;;  %1168 = vst [vmem:[%s3590_s1 + $0x40] sm:$0xff] %v1042_v62  ;;  %v1055_v12 = vmul.f32 %v2957_v6, %v2334_v37  ;;  %v1056_v22 = vmul.f32 %v2957_v6, %v2338_v28  ;;  %v1057_v23 = vmul.f32 %v2957_v6, %v2344_v24  ;;  %v3962_v62 = vld [vmem:[#allocation10_spill] sm:$0xff] }
 0x260   :  { %1169 = vst [vmem:[%s3590_s1 + $0x48] sm:$0xff] %v1043_v2  ;;  %1170 = vst [vmem:[%s3590_s1 + $0x50] sm:$0xff] %v1044_v8  ;;  %v1058_v21 = vmul.f32 %v2957_v6, %v2350_v13  ;;  %v1059_v39 = vmul.f32 %v2957_v6, %v2354_v35  ;;  %v1060_v56 = vmul.f32 %v2957_v6, %v2358_v3  ;;  %v3963_v8 = vld [vmem:[#allocation11_spill] sm:$0xff] }
 0x261   :  { %1171 = vst [vmem:[%s3590_s1 + $0x58] sm:$0xff] %v1045_v9  ;;  %1172 = vst [vmem:[%s3590_s1 + $0x60] sm:$0xff] %v1046_v16  ;;  %v1061_v50 = vmul.f32 %v2957_v6, %v2364_v0  ;;  %v1062_v37 = vmul.f32 %v2957_v6, %v2370_v17  ;;  %v1063_v28 = vmul.f32 %v2957_v6, %v2374_v49  ;;  %v3964_v16 = vld [vmem:[#allocation14_spill] sm:$0xff] }
 0x262   :  { %1173 = vst [vmem:[%s3590_s1 + $0x68] sm:$0xff] %v1047_v63  ;;  %1174 = vst [vmem:[%s3590_s1 + $0x70] sm:$0xff] %v1048_v59  ;;  %v1064_v24 = vmul.f32 %v2957_v6, %v2378_v51  ;;  %v1065_v13 = vmul.f32 %v2957_v6, %v2384_v40  ;;  %v1066_v35 = vmul.f32 %v2957_v6, %v2390_v18  ;;  %v3947_v40 = vld [vmem:[#allocation62_spill] sm:$0xff]  ;;  %v3965_v59 = vld [vmem:[#allocation15_spill] sm:$0xff] }
 0x263   :  { %1175 = vst [vmem:[%s3590_s1 + $0x78] sm:$0xff] %v1049_v43  ;;  %1176 = vst [vmem:[%s3590_s1 + $0x80] sm:$0xff] %v1050_v44  ;;  %v1067_v3 = vmul.f32 %v2957_v6, %v2394_v47  ;;  %v1068_v0 = vmul.f32 %v2957_v6, %v2398_v14  ;;  %v1069_v17 = vmul.f32 %v2957_v6, %v2404_v4  ;;  %v3948_v47 = vld [vmem:[#allocation63_spill] sm:$0xff]  ;;  %v3949_v4 = vld [vmem:[#allocation64_spill] sm:$0xff] }
 0x264   :  { %1177 = vst [vmem:[%s3590_s1 + $0x88] sm:$0xff] %v1051_v38  ;;  %1178 = vst [vmem:[%s3590_s1 + $0x90] sm:$0xff] %v1052_v32  ;;  %v1070_v49 = vmul.f32 %v2957_v6, %v2410_v55  ;;  %v1071_v51 = vmul.f32 %v2957_v6, %v2414_v7  ;;  %v1072_v18 = vmul.f32 %v2957_v6, %v3947_v40  ;;  %v3950_v7 = vld [vmem:[#allocation8_spill] sm:$0xff]  ;;  %v3967_v32 = vld [vmem:[#allocation21_spill] sm:$0xff] }
 0x265   :  { %1179 = vst [vmem:[%s3590_s1 + $0x98] sm:$0xff] %v1053_v26  ;;  %1180 = vst [vmem:[%s3590_s1 + $0xa0] sm:$0xff] %v1054_v19  ;;  %v1073_v14 = vmul.f32 %v2957_v6, %v3948_v47  ;;  %v1074_v55 = vmul.f32 %v2957_v6, %v3949_v4  ;;  %v1075_v45 = vmul.f32 %v2957_v6, %v3950_v7  ;;  %v3966_v44 = vld [vmem:[#allocation20_spill] sm:$0xff]  ;;  %v3968_v19 = vld [vmem:[#allocation18_spill] sm:$0xff] }
 0x266   :  { %1181 = vst [vmem:[%s3590_s1 + $0xa8] sm:$0xff] %v1055_v12  ;;  %1182 = vst [vmem:[%s3590_s1 + $0xb0] sm:$0xff] %v1056_v22  ;;  %v1076_v1 = vmul.f32 %v2957_v6, %v3951_v61  ;;  %v1077_v5 = vmul.f32 %v2957_v6, %v3952_v58  ;;  %v1078_v57 = vmul.f32 %v2957_v6, %v3953_v41  ;;  %v3969_v22 = vld [vmem:[#allocation19_spill] sm:$0xff]  ;;  %v3978_v47 = vld [vmem:[#allocation32_spill] sm:$0xff] }
 0x267   :  { %1183 = vst [vmem:[%s3590_s1 + $0xb8] sm:$0xff] %v1057_v23  ;;  %1184 = vst [vmem:[%s3590_s1 + $0xc0] sm:$0xff] %v1058_v21  ;;  %v1079_v53 = vmul.f32 %v2957_v6, %v3954_v52  ;;  %v1080_v54 = vmul.f32 %v2957_v6, %v3955_v60  ;;  %v1081_v42 = vmul.f32 %v2957_v6, %v3956_v27  ;;  %v3970_v21 = vld [vmem:[#allocation24_spill] sm:$0xff]  ;;  %v3977_v40 = vld [vmem:[#allocation27_spill] sm:$0xff] }
 0x268   :  { %1185 = vst [vmem:[%s3590_s1 + $0xc8] sm:$0xff] %v1059_v39  ;;  %1186 = vst [vmem:[%s3590_s1 + $0xd0] sm:$0xff] %v1060_v56  ;;  %v1082_v20 = vmul.f32 %v2957_v6, %v3957_v10  ;;  %v1083_v29 = vmul.f32 %v2957_v6, %v3958_v25  ;;  %v1084_v31 = vmul.f32 %v2957_v6, %v3959_v30  ;;  %v3971_v56 = vld [vmem:[#allocation25_spill] sm:$0xff]  ;;  %v3980_v7 = vld [vmem:[#allocation30_spill] sm:$0xff] }
 0x269   :  { %1187 = vst [vmem:[%s3590_s1 + $0xd8] sm:$0xff] %v1061_v50  ;;  %1188 = vst [vmem:[%s3590_s1 + $0xe0] sm:$0xff] %v1062_v37  ;;  %v1085_v34 = vmul.f32 %v2957_v6, %v3960_v36  ;;  %v1086_v15 = vmul.f32 %v2957_v6, %v3961_v11  ;;  %v1087_v2 = vmul.f32 %v2957_v6, %v3962_v62  ;;  %v3972_v37 = vld [vmem:[#allocation22_spill] sm:$0xff]  ;;  %v3979_v4 = vld [vmem:[#allocation33_spill] sm:$0xff] }
 0x26a   :  { %1189 = vst [vmem:[%s3590_s1 + $0xe8] sm:$0xff] %v1063_v28  ;;  %1190 = vst [vmem:[%s3590_s1 + $0xf0] sm:$0xff] %v1064_v24  ;;  %v1088_v9 = vmul.f32 %v2957_v6, %v3963_v8  ;;  %v1089_v63 = vmul.f32 %v2957_v6, %v3964_v16  ;;  %v1090_v43 = vmul.f32 %v2957_v6, %v3965_v59  ;;  %v3973_v24 = vld [vmem:[#allocation23_spill] sm:$0xff]  ;;  %v3982_v58 = vld [vmem:[#allocation36_spill] sm:$0xff] }
 0x26b   :  { %1191 = vst [vmem:[%s3590_s1 + $0xf8] sm:$0xff] %v1065_v13  ;;  %1192 = vst [vmem:[%s3590_s1 + $0x100] sm:$0xff] %v1066_v35  ;;  %v1091_v38 = vmul.f32 %v2957_v6, %v3966_v44  ;;  %v1092_v26 = vmul.f32 %v2957_v6, %v3967_v32  ;;  %v1093_v12 = vmul.f32 %v2957_v6, %v3968_v19  ;;  %v3974_v35 = vld [vmem:[#allocation28_spill] sm:$0xff]  ;;  %v3981_v61 = vld [vmem:[#allocation31_spill] sm:$0xff] }
 0x26c   :  { %1193 = vst [vmem:[%s3590_s1 + $0x108] sm:$0xff] %v1067_v3  ;;  %1194 = vst [vmem:[%s3590_s1 + $0x110] sm:$0xff] %v1068_v0  ;;  %v1094_v23 = vmul.f32 %v2957_v6, %v3969_v22  ;;  %v1095_v39 = vmul.f32 %v2957_v6, %v3970_v21  ;;  %v1096_v50 = vmul.f32 %v2957_v6, %v3971_v56  ;;  %v3975_v0 = vld [vmem:[#allocation29_spill] sm:$0xff]  ;;  %v3984_v52 = vld [vmem:[#allocation34_spill] sm:$0xff] }
 0x26d   :  { %1195 = vst [vmem:[%s3590_s1 + $0x118] sm:$0xff] %v1069_v17  ;;  %1196 = vst [vmem:[%s3590_s1 + $0x120] sm:$0xff] %v1070_v49  ;;  %v1097_v28 = vmul.f32 %v2957_v6, %v3972_v37  ;;  %v1098_v13 = vmul.f32 %v2957_v6, %v3973_v24  ;;  %v1099_v3 = vmul.f32 %v2957_v6, %v3974_v35  ;;  %v3976_v49 = vld [vmem:[#allocation26_spill] sm:$0xff]  ;;  %v3983_v41 = vld [vmem:[#allocation37_spill] sm:$0xff] }
 0x26e   :  { %1197 = vst [vmem:[%s3590_s1 + $0x128] sm:$0xff] %v1071_v51  ;;  %1198 = vst [vmem:[%s3590_s1 + $0x130] sm:$0xff] %v1072_v18  ;;  %v1100_v17 = vmul.f32 %v2957_v6, %v3975_v0  ;;  %v1101_v51 = vmul.f32 %v2957_v6, %v3976_v49  ;;  %v1102_v18 = vmul.f32 %v2957_v6, %v3977_v40  ;;  %v3985_v60 = vld [vmem:[#allocation35_spill] sm:$0xff]  ;;  %v3986_v27 = vld [vmem:[#allocation40_spill] sm:$0xff] }
 0x26f   :  { %1199 = vst [vmem:[%s3590_s1 + $0x138] sm:$0xff] %v1073_v14  ;;  %1200 = vst [vmem:[%s3590_s1 + $0x140] sm:$0xff] %v1074_v55  ;;  %v1103_v14 = vmul.f32 %v2957_v6, %v3978_v47  ;;  %v1104_v55 = vmul.f32 %v2957_v6, %v3979_v4  ;;  %v3987_v10 = vld [vmem:[#allocation41_spill] sm:$0xff]  ;;  %v3988_v25 = vld [vmem:[#allocation38_spill] sm:$0xff]  ;;  %v1134_v4 = vmul.f32 %v2957_v6, %v2852_v33 }
 0x270   :  { %1201 = vst [vmem:[%s3590_s1 + $0x148] sm:$0xff] %v1075_v45  ;;  %1202 = vst [vmem:[%s3590_s1 + $0x150] sm:$0xff] %v1076_v1  ;;  %v1105_v45 = vmul.f32 %v2957_v6, %v3980_v7  ;;  %v1106_v1 = vmul.f32 %v2957_v6, %v3981_v61  ;;  %v3989_v30 = vld [vmem:[#allocation39_spill] sm:$0xff]  ;;  %v3990_v36 = vld [vmem:[#allocation44_spill] sm:$0xff]  ;;  %v1136_v7 = vmul.f32 %v2957_v6, %v2864_v48 }
 0x271   :  { %1203 = vst [vmem:[%s3590_s1 + $0x158] sm:$0xff] %v1077_v5  ;;  %1204 = vst [vmem:[%s3590_s1 + $0x160] sm:$0xff] %v1078_v57  ;;  %v1107_v5 = vmul.f32 %v2957_v6, %v3982_v58  ;;  %v1108_v57 = vmul.f32 %v2957_v6, %v3983_v41  ;;  %v3991_v11 = vld [vmem:[#allocation45_spill] sm:$0xff]  ;;  %v3992_v62 = vld [vmem:[#allocation42_spill] sm:$0xff] }
 0x272   :  { %1205 = vst [vmem:[%s3590_s1 + $0x168] sm:$0xff] %v1079_v53  ;;  %1206 = vst [vmem:[%s3590_s1 + $0x170] sm:$0xff] %v1080_v54  ;;  %v1109_v53 = vmul.f32 %v2957_v6, %v3984_v52  ;;  %v1110_v54 = vmul.f32 %v2957_v6, %v3985_v60  ;;  %v3993_v8 = vld [vmem:[#allocation43_spill] sm:$0xff]  ;;  %v3994_v16 = vld [vmem:[#allocation48_spill] sm:$0xff] }
 0x273   :  { %1207 = vst [vmem:[%s3590_s1 + $0x178] sm:$0xff] %v1081_v42  ;;  %1208 = vst [vmem:[%s3590_s1 + $0x180] sm:$0xff] %v1082_v20  ;;  %v1111_v42 = vmul.f32 %v2957_v6, %v3986_v27  ;;  %v1112_v20 = vmul.f32 %v2957_v6, %v3987_v10  ;;  %v3995_v59 = vld [vmem:[#allocation49_spill] sm:$0xff]  ;;  %v3996_v44 = vld [vmem:[#allocation46_spill] sm:$0xff] }
 0x274   :  { %1209 = vst [vmem:[%s3590_s1 + $0x188] sm:$0xff] %v1083_v29  ;;  %1210 = vst [vmem:[%s3590_s1 + $0x190] sm:$0xff] %v1084_v31  ;;  %v1113_v29 = vmul.f32 %v2957_v6, %v3988_v25  ;;  %v1114_v31 = vmul.f32 %v2957_v6, %v3989_v30  ;;  %v3997_v32 = vld [vmem:[#allocation47_spill] sm:$0xff]  ;;  %v3998_v19 = vld [vmem:[#allocation52_spill] sm:$0xff] }
 0x275   :  { %1211 = vst [vmem:[%s3590_s1 + $0x198] sm:$0xff] %v1085_v34  ;;  %1212 = vst [vmem:[%s3590_s1 + $0x1a0] sm:$0xff] %v1086_v15  ;;  %v1115_v34 = vmul.f32 %v2957_v6, %v3990_v36  ;;  %v1116_v15 = vmul.f32 %v2957_v6, %v3991_v11  ;;  %v3999_v22 = vld [vmem:[#allocation53_spill] sm:$0xff]  ;;  %v4000_v21 = vld [vmem:[#allocation50_spill] sm:$0xff] }
 0x276   :  { %1213 = vst [vmem:[%s3590_s1 + $0x1a8] sm:$0xff] %v1087_v2  ;;  %1214 = vst [vmem:[%s3590_s1 + $0x1b0] sm:$0xff] %v1088_v9  ;;  %v1117_v2 = vmul.f32 %v2957_v6, %v3992_v62  ;;  %v1118_v9 = vmul.f32 %v2957_v6, %v3993_v8  ;;  %v4001_v56 = vld [vmem:[#allocation51_spill] sm:$0xff]  ;;  %v4002_v37 = vld [vmem:[#allocation56_spill] sm:$0xff] }
 0x277   :  { %1215 = vst [vmem:[%s3590_s1 + $0x1b8] sm:$0xff] %v1089_v63  ;;  %1216 = vst [vmem:[%s3590_s1 + $0x1c0] sm:$0xff] %v1090_v43  ;;  %v1119_v63 = vmul.f32 %v2957_v6, %v3994_v16  ;;  %v1120_v43 = vmul.f32 %v2957_v6, %v3995_v59  ;;  %v4003_v24 = vld [vmem:[#allocation57_spill] sm:$0xff]  ;;  %v4004_v35 = vld [vmem:[#allocation54_spill] sm:$0xff] }
 0x278   :  { %1217 = vst [vmem:[%s3590_s1 + $0x1c8] sm:$0xff] %v1091_v38  ;;  %1218 = vst [vmem:[%s3590_s1 + $0x1d0] sm:$0xff] %v1092_v26  ;;  %v1121_v38 = vmul.f32 %v2957_v6, %v3996_v44  ;;  %v1122_v26 = vmul.f32 %v2957_v6, %v3997_v32  ;;  %v4005_v0 = vld [vmem:[#allocation55_spill] sm:$0xff]  ;;  %v4007_v40 = vld [vmem:[#allocation60_spill] sm:$0xff] }
 0x279   :  { %1219 = vst [vmem:[%s3590_s1 + $0x1d8] sm:$0xff] %v1093_v12  ;;  %1220 = vst [vmem:[%s3590_s1 + $0x1e0] sm:$0xff] %v1094_v23  ;;  %v1123_v12 = vmul.f32 %v2957_v6, %v3998_v19  ;;  %v1124_v23 = vmul.f32 %v2957_v6, %v3999_v22  ;;  %v4006_v49 = vld [vmem:[#allocation59_spill] sm:$0xff]  ;;  %v4008_v47 = vld [vmem:[#allocation58_spill] sm:$0xff] }
 0x27a   :  { %1221 = vst [vmem:[%s3590_s1 + $0x1e8] sm:$0xff] %v1095_v39  ;;  %1222 = vst [vmem:[%s3590_s1 + $0x1f0] sm:$0xff] %v1096_v50  ;;  %v1125_v39 = vmul.f32 %v2957_v6, %v4000_v21  ;;  %v1126_v50 = vmul.f32 %v2957_v6, %v4001_v56  ;;  %v4010_v48 = vld [vmem:[#allocation65_spill] sm:$0xff]  ;;  %v4012_v58 = vld [vmem:[#allocation67_spill] sm:$0xff] }
 0x27b   :  { %1223 = vst [vmem:[%s3590_s1 + $0x1f8] sm:$0xff] %v1097_v28  ;;  %1224 = vst [vmem:[%s3590_s1 + $0x200] sm:$0xff] %v1098_v13  ;;  %v1127_v28 = vmul.f32 %v2957_v6, %v4002_v37  ;;  %v1128_v13 = vmul.f32 %v2957_v6, %v4003_v24  ;;  %v1138_v33 = vmul.f32 %v2957_v6, %v4010_v48  ;;  %v4013_v41 = vld [vmem:[#allocation68_spill] sm:$0xff]  ;;  %v4014_v52 = vld [vmem:[#allocation69_spill] sm:$0xff] }
 0x27c   :  { %1225 = vst [vmem:[%s3590_s1 + $0x208] sm:$0xff] %v1099_v3  ;;  %1226 = vst [vmem:[%s3590_s1 + $0x210] sm:$0xff] %v1100_v17  ;;  %v1129_v3 = vmul.f32 %v2957_v6, %v4004_v35  ;;  %v1130_v17 = vmul.f32 %v2957_v6, %v4005_v0  ;;  %v4015_v60 = vld [vmem:[#allocation70_spill] sm:$0xff]  ;;  %v4016_v27 = vld [vmem:[#allocation71_spill] sm:$0xff] }
 0x27d   :  { %1227 = vst [vmem:[%s3590_s1 + $0x218] sm:$0xff] %v1101_v51  ;;  %1228 = vst [vmem:[%s3590_s1 + $0x220] sm:$0xff] %v1102_v18  ;;  %v1131_v51 = vmul.f32 %v2957_v6, %v4006_v49  ;;  %v1132_v18 = vmul.f32 %v2957_v6, %v4007_v40  ;;  %v4017_v10 = vld [vmem:[#allocation72_spill] sm:$0xff]  ;;  %v4018_v25 = vld [vmem:[#allocation73_spill] sm:$0xff] }
 0x27e   :  { %1229 = vst [vmem:[%s3590_s1 + $0x228] sm:$0xff] %v1103_v14  ;;  %1230 = vst [vmem:[%s3590_s1 + $0x230] sm:$0xff] %v1104_v55  ;;  %v1133_v14 = vmul.f32 %v2957_v6, %v4008_v47  ;;  %v1135_v55 = vmul.f32 %v2957_v6, %v2858_v46  ;;  %v4011_v46 = vld [vmem:[#allocation66_spill] sm:$0xff]  ;;  %v4020_v36 = vld [vmem:[#allocation75_spill] sm:$0xff] }
 0x27f   :  { %1231 = vst [vmem:[%s3590_s1 + $0x238] sm:$0xff] %v1105_v45  ;;  %1232 = vst [vmem:[%s3590_s1 + $0x240] sm:$0xff] %v1106_v1  ;;  %v4009_v45 = vld [vmem:[#allocation61_spill] sm:$0xff]  ;;  %v1139_v1 = vmul.f32 %v2957_v6, %v4011_v46  ;;  %v4019_v30 = vld [vmem:[#allocation74_spill] sm:$0xff] }
 0x280   :  { %1233 = vst [vmem:[%s3590_s1 + $0x248] sm:$0xff] %v1107_v5  ;;  %1234 = vst [vmem:[%s3590_s1 + $0x250] sm:$0xff] %v1108_v57  ;;  %v1137_v61 = vmul.f32 %v2957_v6, %v4009_v45  ;;  %v1140_v5 = vmul.f32 %v2957_v6, %v4012_v58  ;;  %v1141_v57 = vmul.f32 %v2957_v6, %v4013_v41  ;;  %v4021_v11 = vld [vmem:[#allocation76_spill] sm:$0xff]  ;;  %v4022_v62 = vld [vmem:[#allocation77_spill] sm:$0xff] }
 0x281   :  { %1235 = vst [vmem:[%s3590_s1 + $0x258] sm:$0xff] %v1109_v53  ;;  %1236 = vst [vmem:[%s3590_s1 + $0x260] sm:$0xff] %v1110_v54  ;;  %v1142_v53 = vmul.f32 %v2957_v6, %v4014_v52  ;;  %v1143_v54 = vmul.f32 %v2957_v6, %v4015_v60  ;;  %v4023_v8 = vld [vmem:[#allocation78_spill] sm:$0xff]  ;;  %v4024_v16 = vld [vmem:[#allocation79_spill] sm:$0xff] }
 0x282   :  { %1237 = vst [vmem:[%s3590_s1 + $0x268] sm:$0xff] %v1111_v42  ;;  %1238 = vst [vmem:[%s3590_s1 + $0x270] sm:$0xff] %v1112_v20  ;;  %v1144_v42 = vmul.f32 %v2957_v6, %v4016_v27  ;;  %v1145_v20 = vmul.f32 %v2957_v6, %v4017_v10  ;;  %v4025_v59 = vld [vmem:[#allocation80_spill] sm:$0xff]  ;;  %v4026_v44 = vld [vmem:[#allocation81_spill] sm:$0xff] }
 0x283   :  { %1239 = vst [vmem:[%s3590_s1 + $0x278] sm:$0xff] %v1113_v29  ;;  %1240 = vst [vmem:[%s3590_s1 + $0x280] sm:$0xff] %v1114_v31  ;;  %v1146_v29 = vmul.f32 %v2957_v6, %v4018_v25  ;;  %v1147_v31 = vmul.f32 %v2957_v6, %v4019_v30  ;;  %v4027_v32 = vld [vmem:[#allocation82_spill] sm:$0xff]  ;;  %v4028_v19 = vld [vmem:[#allocation83_spill] sm:$0xff] }
 0x284   :  { %1241 = vst [vmem:[%s3590_s1 + $0x288] sm:$0xff] %v1115_v34  ;;  %1242 = vst [vmem:[%s3590_s1 + $0x290] sm:$0xff] %v1116_v15  ;;  %v1148_v34 = vmul.f32 %v2957_v6, %v4020_v36  ;;  %v1149_v15 = vmul.f32 %v2957_v6, %v4021_v11  ;;  %v4029_v22 = vld [vmem:[#allocation84_spill] sm:$0xff]  ;;  %v4030_v21 = vld [vmem:[#allocation85_spill] sm:$0xff] }
 0x285   :  { %1243 = vst [vmem:[%s3590_s1 + $0x298] sm:$0xff] %v1117_v2  ;;  %1244 = vst [vmem:[%s3590_s1 + $0x2a0] sm:$0xff] %v1118_v9  ;;  %v1150_v2 = vmul.f32 %v2957_v6, %v4022_v62  ;;  %v1151_v9 = vmul.f32 %v2957_v6, %v4023_v8  ;;  %v4031_v56 = vld [vmem:[#allocation86_spill] sm:$0xff] }
 0x286   :  { %1245 = vst [vmem:[%s3590_s1 + $0x2a8] sm:$0xff] %v1119_v63  ;;  %1246 = vst [vmem:[%s3590_s1 + $0x2b0] sm:$0xff] %v1120_v43  ;;  %v1152_v63 = vmul.f32 %v2957_v6, %v4024_v16  ;;  %v1153_v43 = vmul.f32 %v2957_v6, %v4025_v59 }
 0x287   :  { %1247 = vst [vmem:[%s3590_s1 + $0x2b8] sm:$0xff] %v1121_v38  ;;  %1248 = vst [vmem:[%s3590_s1 + $0x2c0] sm:$0xff] %v1122_v26  ;;  %v1154_v38 = vmul.f32 %v2957_v6, %v4026_v44  ;;  %v1155_v26 = vmul.f32 %v2957_v6, %v4027_v32 }
 0x288   :  { %1249 = vst [vmem:[%s3590_s1 + $0x2c8] sm:$0xff] %v1123_v12  ;;  %1250 = vst [vmem:[%s3590_s1 + $0x2d0] sm:$0xff] %v1124_v23  ;;  %v1156_v12 = vmul.f32 %v2957_v6, %v4028_v19  ;;  %v1157_v23 = vmul.f32 %v2957_v6, %v4029_v22 }
 0x289   :  { %1251 = vst [vmem:[%s3590_s1 + $0x2d8] sm:$0xff] %v1125_v39  ;;  %1252 = vst [vmem:[%s3590_s1 + $0x2e0] sm:$0xff] %v1126_v50  ;;  %v1158_v39 = vmul.f32 %v2957_v6, %v4030_v21  ;;  %v1159_v50 = vmul.f32 %v2957_v6, %v4031_v56 }
 0x28a   :  { %1253 = vst [vmem:[%s3590_s1 + $0x2e8] sm:$0xff] %v1127_v28  ;;  %1254 = vst [vmem:[%s3590_s1 + $0x2f0] sm:$0xff] %v1128_v13 }
 0x28b   :  { %1255 = vst [vmem:[%s3590_s1 + $0x2f8] sm:$0xff] %v1129_v3  ;;  %1256 = vst [vmem:[%s3590_s1 + $0x300] sm:$0xff] %v1130_v17 }
 0x28c   :  { %1257 = vst [vmem:[%s3590_s1 + $0x308] sm:$0xff] %v1131_v51  ;;  %1258 = vst [vmem:[%s3590_s1 + $0x310] sm:$0xff] %v1132_v18 }
 0x28d   :  { %1259 = vst [vmem:[%s3590_s1 + $0x318] sm:$0xff] %v1133_v14  ;;  %1260 = vst [vmem:[%s3590_s1 + $0x320] sm:$0xff] %v1134_v4 }
 0x28e   :  { %1261 = vst [vmem:[%s3590_s1 + $0x328] sm:$0xff] %v1135_v55  ;;  %1262 = vst [vmem:[%s3590_s1 + $0x330] sm:$0xff] %v1136_v7 }
 0x28f   :  { %1263 = vst [vmem:[%s3590_s1 + $0x338] sm:$0xff] %v1137_v61  ;;  %1264 = vst [vmem:[%s3590_s1 + $0x340] sm:$0xff] %v1138_v33 }
 0x290   :  { %1265 = vst [vmem:[%s3590_s1 + $0x348] sm:$0xff] %v1139_v1  ;;  %1266 = vst [vmem:[%s3590_s1 + $0x350] sm:$0xff] %v1140_v5 }
 0x291   :  { %1267 = vst [vmem:[%s3590_s1 + $0x358] sm:$0xff] %v1141_v57  ;;  %1268 = vst [vmem:[%s3590_s1 + $0x360] sm:$0xff] %v1142_v53 }
 0x292   :  { %1269 = vst [vmem:[%s3590_s1 + $0x368] sm:$0xff] %v1143_v54  ;;  %1270 = vst [vmem:[%s3590_s1 + $0x370] sm:$0xff] %v1144_v42 }
 0x293   :  { %1271 = vst [vmem:[%s3590_s1 + $0x378] sm:$0xff] %v1145_v20  ;;  %1272 = vst [vmem:[%s3590_s1 + $0x380] sm:$0xff] %v1146_v29 }
 0x294   :  { %1273 = vst [vmem:[%s3590_s1 + $0x388] sm:$0xff] %v1147_v31  ;;  %1274 = vst [vmem:[%s3590_s1 + $0x390] sm:$0xff] %v1148_v34 }
 0x295   :  { %1275 = vst [vmem:[%s3590_s1 + $0x398] sm:$0xff] %v1149_v15  ;;  %1276 = vst [vmem:[%s3590_s1 + $0x3a0] sm:$0xff] %v1150_v2 }
 0x296   :  { %1277 = vst [vmem:[%s3590_s1 + $0x3a8] sm:$0xff] %v1151_v9  ;;  %1278 = vst [vmem:[%s3590_s1 + $0x3b0] sm:$0xff] %v1152_v63 }
 0x297   :  { %1279 = vst [vmem:[%s3590_s1 + $0x3b8] sm:$0xff] %v1153_v43  ;;  %1280 = vst [vmem:[%s3590_s1 + $0x3c0] sm:$0xff] %v1154_v38 }
 0x298   :  { %1281 = vst [vmem:[%s3590_s1 + $0x3c8] sm:$0xff] %v1155_v26  ;;  %1282 = vst [vmem:[%s3590_s1 + $0x3d0] sm:$0xff] %v1156_v12 }
 0x299   :  { %1283 = vst [vmem:[%s3590_s1 + $0x3d8] sm:$0xff] %v1157_v23  ;;  %1284 = vst [vmem:[%s3590_s1 + $0x3e0] sm:$0x1f] %v1158_v39 }
 0x29a   :  { %1285 = vst [vmem:[%s3590_s1 + $0x3e8] sm:$0x1f] %v1159_v50 }

</bundles_post_ra>
